<compile_context>
chip_gen: v5e
topology: v5e:2x2
jax: 0.10.0
libtpu: 0.0.40
codegen_flags: <defaults>
</compile_context>

<pallas_src>
import functools

import jax
import jax.numpy as jnp
from jax.experimental import pallas as pl
from jax.experimental.pallas import tpu as pltpu


# ----------------------------- small helpers -----------------------------

def _round_up(x, m):
    return (x + m - 1) // m * m


def _pad_axis(a, axis, new_size):
    if a.shape[axis] == new_size:
        return a
    pad = [(0, 0)] * a.ndim
    pad[axis] = (0, new_size - a.shape[axis])
    return jnp.pad(a, pad)


def _pick_row_tile(m, max_tile=512):
    # Largest row tile <= max_tile that evenly divides m (multiple of 8 preferred):
    # big tiles keep the per-grid-step overhead (~0.35us) amortized while staying
    # comfortably inside the scoped-VMEM budget for these channel counts.
    if m <= max_tile:
        return m
    start = max_tile - (max_tile % 8)
    for t in range(start, 7, -8):
        if m % t == 0:
            return t
    return m  # fallback: single full-extent block


_COMPILER_PARAMS = pltpu.CompilerParams(
    dimension_semantics=("parallel", "parallel"),
    vmem_limit_bytes=64 << 20,
)


# ----------------------------- Pallas kernels -----------------------------

def _pw_expand_kernel(x_ref, w_ref, scale_ref, bias_ref, o_ref):
    # 1x1 expansion conv as matmul over a (TM, Cin_p) row tile + folded BN + swish.
    y = jnp.dot(x_ref[0].astype(jnp.float32), w_ref[...].astype(jnp.float32),
                preferred_element_type=jnp.float32)
    y = y * scale_ref[...] + bias_ref[...]
    y = y * jax.nn.sigmoid(y)
    o_ref[0] = y.astype(o_ref.dtype)


def _pw_project_kernel(x_ref, gate_ref, w_ref, scale_ref, bias_ref, o_ref):
    # 1x1 projection conv with the SE gate fused (rows scaled before the matmul) + folded BN.
    xg = x_ref[0].astype(jnp.float32) * gate_ref[0]
    y = jnp.dot(xg, w_ref[...].astype(jnp.float32), preferred_element_type=jnp.float32)
    y = y * scale_ref[...] + bias_ref[...]
    o_ref[0] = y.astype(o_ref.dtype)


def _pw_project_res_kernel(x_ref, gate_ref, w_ref, scale_ref, bias_ref, res_ref, o_ref):
    # Projection with fused SE gate + folded BN + residual add.
    xg = x_ref[0].astype(jnp.float32) * gate_ref[0]
    y = jnp.dot(xg, w_ref[...].astype(jnp.float32), preferred_element_type=jnp.float32)
    y = y * scale_ref[...] + bias_ref[...]
    y = y + res_ref[0].astype(jnp.float32)
    o_ref[0] = y.astype(o_ref.dtype)


def _dw_bn_swish_pool_kernel(x_ref, w_ref, scale_ref, bias_ref, o_ref, sum_ref,
                             *, K, Ho, Wo, stride):
    # Depthwise KxK conv (stride handled directly via strided taps) + folded BN + swish.
    # Also emits the spatial sum of the swished output (SE global-avg-pool numerator)
    # while the tile is still in VMEM.
    #   x_ref: (1, Hp, Wp, Ct) padded input tile
    #   w_ref: (K*K, Ct) taps,  scale/bias: (1, Ct)
    #   o_ref: (1, Ho, Wo, Ct), sum_ref: (1, 1, Ct)
    wts = w_ref[...].astype(jnp.float32)          # hoisted: loaded once per tile
    Ct = wts.shape[-1]
    acc = jnp.zeros((Ho, Wo, Ct), jnp.float32)
    for kh in range(K):                           # static unroll: K*K VPU FMAs
        for kw in range(K):
            if stride == 1:
                patch = x_ref[0, pl.ds(kh, Ho), pl.ds(kw, Wo), :]
            else:
                patch = x_ref[0, pl.ds(kh, Ho, stride=stride),
                              pl.ds(kw, Wo, stride=stride), :]
            acc = acc + patch.astype(jnp.float32) * wts[kh * K + kw, :]
    y = acc * scale_ref[...] + bias_ref[...]
    y = y * jax.nn.sigmoid(y)
    o_ref[0] = y.astype(o_ref.dtype)
    sum_ref[...] = jnp.sum(y, axis=(0, 1)).reshape(1, 1, Ct).astype(sum_ref.dtype)


# ----------------------------- Pallas wrappers -----------------------------

def pointwise_expand(x3d, w, scale, bias):
    # x3d: (N, M, Cin_p), w: (Cin_p, C_p)
    N, M, Cin_p = x3d.shape
    C_p = w.shape[1]
    TM = _pick_row_tile(M)
    grid = (N, M // TM)
    return pl.pallas_call(
        _pw_expand_kernel,
        grid=grid,
        in_specs=[
            pl.BlockSpec((1, TM, Cin_p), lambda n, r: (n, r, 0)),
            pl.BlockSpec((Cin_p, C_p), lambda n, r: (0, 0)),
            pl.BlockSpec((1, C_p), lambda n, r: (0, 0)),
            pl.BlockSpec((1, C_p), lambda n, r: (0, 0)),
        ],
        out_specs=pl.BlockSpec((1, TM, C_p), lambda n, r: (n, r, 0)),
        out_shape=jax.ShapeDtypeStruct((N, M, C_p), x3d.dtype),
        compiler_params=_COMPILER_PARAMS,
    )(x3d, w, scale.reshape(1, -1), bias.reshape(1, -1))


def pointwise_project(x3d, gate, w, scale, bias, residual=None):
    # x3d: (N, M, C_p), gate: (N, 1, C_p), w: (C_p, Cout_p)
    N, M, C_p = x3d.shape
    Cout_p = w.shape[1]
    TM = _pick_row_tile(M)
    grid = (N, M // TM)
    in_specs = [
        pl.BlockSpec((1, TM, C_p), lambda n, r: (n, r, 0)),
        pl.BlockSpec((1, 1, C_p), lambda n, r: (n, 0, 0)),
        pl.BlockSpec((C_p, Cout_p), lambda n, r: (0, 0)),
        pl.BlockSpec((1, Cout_p), lambda n, r: (0, 0)),
        pl.BlockSpec((1, Cout_p), lambda n, r: (0, 0)),
    ]
    args = [x3d, gate, w, scale.reshape(1, -1), bias.reshape(1, -1)]
    if residual is not None:
        in_specs.append(pl.BlockSpec((1, TM, Cout_p), lambda n, r: (n, r, 0)))
        args.append(residual)
        kernel = _pw_project_res_kernel
    else:
        kernel = _pw_project_kernel
    return pl.pallas_call(
        kernel,
        grid=grid,
        in_specs=in_specs,
        out_specs=pl.BlockSpec((1, TM, Cout_p), lambda n, r: (n, r, 0)),
        out_shape=jax.ShapeDtypeStruct((N, M, Cout_p), x3d.dtype),
        compiler_params=_COMPILER_PARAMS,
    )(*args)


def depthwise_conv_bn_swish_pool(x_pad, w_flat, scale, bias, *, K, stride):
    # x_pad: (N, Hp, Wp, C_p) spatially padded; returns (feature map, spatial sums).
    N, Hp, Wp, C_p = x_pad.shape
    Ho = (Hp - K) // stride + 1
    Wo = (Wp - K) // stride + 1
    CT = 128 if (C_p % 128 == 0) else C_p
    grid = (N, C_p // CT)
    out_shape = (
        jax.ShapeDtypeStruct((N, Ho, Wo, C_p), x_pad.dtype),
        jax.ShapeDtypeStruct((N, 1, C_p), jnp.float32),
    )
    out_specs = (
        pl.BlockSpec((1, Ho, Wo, CT), lambda n, c: (n, 0, 0, c)),
        pl.BlockSpec((1, 1, CT), lambda n, c: (n, 0, c)),
    )
    return pl.pallas_call(
        functools.partial(_dw_bn_swish_pool_kernel, K=K, Ho=Ho, Wo=Wo, stride=stride),
        grid=grid,
        in_specs=[
            pl.BlockSpec((1, Hp, Wp, CT), lambda n, c: (n, 0, 0, c)),
            pl.BlockSpec((K * K, CT), lambda n, c: (0, c)),
            pl.BlockSpec((1, CT), lambda n, c: (0, c)),
            pl.BlockSpec((1, CT), lambda n, c: (0, c)),
        ],
        out_specs=out_specs,
        out_shape=out_shape,
        compiler_params=_COMPILER_PARAMS,
    )(x_pad, w_flat, scale.reshape(1, -1), bias.reshape(1, -1))


# ----------------------------- MBconv forward -----------------------------

def mbconv_forward(x_nchw, p, *, kernel_size, stride, expand_ratio):
    x = jnp.transpose(x_nchw, (0, 2, 3, 1))          # NCHW -> NHWC
    N, H, W, Cin = x.shape
    C = p["w3"].shape[0]                             # expanded channels
    Cout = p["w3"].shape[1]
    has_skip = (stride == 1) and (Cin == Cout)

    LANE = 128
    Cin_p = _round_up(Cin, LANE)
    C_p = _round_up(C, LANE)
    Cout_p = _round_up(Cout, LANE)

    # channel-pad input once (padded lanes carry exact zeros end-to-end:
    # padded BN scale/bias are zero so swish(0)=0, padded weight rows/cols are zero)
    x_p = _pad_axis(x, 3, Cin_p)                     # (N, H, W, Cin_p)

    # 1) expansion (skipped if expand_ratio == 1, matching the PyTorch module)
    if expand_ratio == 1:
        out = x_p                                    # C_p == Cin_p here
    else:
        w1 = _pad_axis(_pad_axis(p["w1"], 0, Cin_p), 1, C_p)
        s1 = _pad_axis(p["s1"], 0, C_p)
        b1 = _pad_axis(p["b1"], 0, C_p)
        out3d = pointwise_expand(x_p.reshape(N, H * W, Cin_p), w1, s1, b1)
        out = out3d.reshape(N, H, W, C_p)

    # 2) depthwise conv + BN + swish (strided in-kernel) + fused SE pool sums
    pad = 1 if kernel_size == 3 else 2
    xpad = jnp.pad(out, ((0, 0), (pad, pad), (pad, pad), (0, 0)))
    wd = _pad_axis(p["wd"], 1, C_p)
    s2 = _pad_axis(p["s2"], 0, C_p)
    b2 = _pad_axis(p["b2"], 0, C_p)
    dw, sums = depthwise_conv_bn_swish_pool(xpad, wd, s2, b2,
                                            K=kernel_size, stride=stride)
    _, Ho, Wo, _ = dw.shape

    # 3) SE gate: tiny FCs on (N, C) pooled vectors, batched across N (plain XLA)
    pooled = sums[:, 0, :C] / float(Ho * Wo)                     # (N, C)
    h = pooled @ p["wse1"] + p["bse1"]
    h = h * jax.nn.sigmoid(h)
    s = jax.nn.sigmoid(h @ p["wse2"] + p["bse2"])                # (N, C)
    gate = _pad_axis(s, 1, C_p)[:, None, :]                      # (N, 1, C_p)

    # 4) projection conv with fused SE gate + folded BN (+ residual)
    w3 = _pad_axis(_pad_axis(p["w3"], 0, C_p), 1, Cout_p)
    s3 = _pad_axis(p["s3"], 0, Cout_p)
    b3 = _pad_axis(p["b3"], 0, Cout_p)
    res3d = x_p.reshape(N, H * W, Cin_p) if has_skip else None
    out3d = pointwise_project(dw.reshape(N, Ho * Wo, C_p), gate, w3, s3, b3,
                              residual=res3d)
    out = out3d.reshape(N, Ho, Wo, Cout_p)[..., :Cout]
    return jnp.transpose(out, (0, 3, 1, 2))          # back to NCHW


# ----------------------------- params (deterministic) -----------------------------

def _bn_fold(key, n, eps=1e-5):
    k1, k2, k3, k4 = jax.random.split(key, 4)
    gamma = 0.5 + jax.random.uniform(k1, (n,), jnp.float32)
    beta = 0.1 * jax.random.normal(k2, (n,), jnp.float32)
    mean = 0.1 * jax.random.normal(k3, (n,), jnp.float32)
    var = 0.5 + jax.random.uniform(k4, (n,), jnp.float32)
    scale = gamma / jnp.sqrt(var + eps)
    bias = beta - mean * scale
    return scale, bias


def init_params(key, cin, cout, k, expand_ratio, se_ratio):
    c = expand_ratio * cin
    se_c = int(cin * se_ratio)
    ks = jax.random.split(key, 9)

    def nrm(kk, shape, scale=0.2):
        return scale * jax.random.normal(kk, shape, jnp.float32)

    p = {}
    p["w1"] = nrm(ks[0], (cin, c))            # conv1 1x1 weight (Cin, C)
    p["s1"], p["b1"] = _bn_fold(ks[1], c)     # bn1 folded
    p["wd"] = nrm(ks[2], (k * k, c))          # depthwise weight, flattened taps
    p["s2"], p["b2"] = _bn_fold(ks[3], c)     # bn2 folded
    p["wse1"] = nrm(ks[4], (c, se_c))         # SE reduce (with bias)
    p["bse1"] = nrm(ks[5], (se_c,), 0.1)
    p["wse2"] = nrm(ks[6], (se_c, c))         # SE expand (with bias)
    p["bse2"] = nrm(ks[7], (c,), 0.1)
    p["w3"] = nrm(ks[8], (c, cout))           # conv3 1x1 weight (C, Cout)
    p["s3"], p["b3"] = _bn_fold(jax.random.fold_in(key, 99), cout)  # bn3 folded
    return p


# ----------------------------- pure-JAX reference -----------------------------

def ref_mbconv(x_nchw, p, *, kernel_size, stride, expand_ratio):
    x = jnp.transpose(x_nchw, (0, 2, 3, 1)).astype(jnp.float32)
    N, H, W, Cin = x.shape
    Cout = p["w3"].shape[1]
    has_skip = (stride == 1) and (Cin == Cout)
    if expand_ratio == 1:
        out = x
    else:
        y = jnp.einsum("nhwc,cd->nhwd", x, p["w1"]) * p["s1"] + p["b1"]
        out = y * jax.nn.sigmoid(y)
    C = out.shape[-1]
    pad = 1 if kernel_size == 3 else 2
    xp = jnp.pad(out, ((0, 0), (pad, pad), (pad, pad), (0, 0)))
    Hp, Wp = xp.shape[1], xp.shape[2]
    Ho = (Hp - kernel_size) // stride + 1
    Wo = (Wp - kernel_size) // stride + 1
    wd = p["wd"].reshape(kernel_size, kernel_size, C)
    acc = jnp.zeros((N, Ho, Wo, C), jnp.float32)
    for kh in range(kernel_size):
        for kw in range(kernel_size):
            patch = xp[:, kh:kh + Ho * stride:stride, kw:kw + Wo * stride:stride, :]
            acc = acc + patch * wd[kh, kw]
    y = acc * p["s2"] + p["b2"]
    out = y * jax.nn.sigmoid(y)
    pooled = out.mean(axis=(1, 2))
    h = pooled @ p["wse1"] + p["bse1"]
    h = h * jax.nn.sigmoid(h)
    s = jax.nn.sigmoid(h @ p["wse2"] + p["bse2"])
    out = out * s[:, None, None, :]
    y = jnp.einsum("nhwc,cd->nhwd", out, p["w3"]) * p["s3"] + p["b3"]
    if has_skip:
        y = y + x
    return jnp.transpose(y, (0, 3, 1, 2))


# ----------------------------- main -----------------------------

if __name__ == "__main__":
    N, Cin, H, W = 2, 8, 16, 16
    Cout, K, stride, expand_ratio, se_ratio = 8, 3, 1, 2, 0.25

    key = jax.random.PRNGKey(0)
    kx, kp = jax.random.split(key)
    x_nchw = jax.random.normal(kx, (N, Cin, H, W), jnp.float32)
    params = init_params(kp, Cin, Cout, K, expand_ratio, se_ratio)

    out = mbconv_forward(x_nchw, params, kernel_size=K, stride=stride,
                         expand_ratio=expand_ratio)
    out = jax.block_until_ready(out)

    ref = ref_mbconv(x_nchw, params, kernel_size=K, stride=stride,
                     expand_ratio=expand_ratio)

    assert out.shape == ref.shape == (N, Cout, H // stride, W // stride)
    assert bool(jnp.all(jnp.isfinite(out)))
    assert bool(jnp.allclose(out, ref, rtol=1e-2, atol=1e-2))
    print("KERNEL_OK")
</pallas_src>

<mosaic_0001>
module attributes {stable_mosaic.version = 11 : i64} {
  func.func @_pw_expand_kernel(%arg0: i32, %arg1: i32, %arg2: memref<1x256x128xf32, #tpu.memory_space<vmem>>, %arg3: memref<128x128xf32, #tpu.memory_space<vmem>>, %arg4: memref<1x128xf32, #tpu.memory_space<vmem>>, %arg5: memref<1x128xf32, #tpu.memory_space<vmem>>, %arg6: memref<1x256x128xf32, #tpu.memory_space<vmem>>) attributes {dimension_semantics = [#tpu.dimension_semantics<parallel>, #tpu.dimension_semantics<parallel>], iteration_bounds = array<i64: 2, 1>, scalar_prefetch = 0 : i64, scratch_operands = 0 : i64, tpu.core_type = #tpu.core_type<tc>, window_params = [{transform_indices = @transform_0, window_bounds = array<i64: 1, 256, 128>}, {pipeline_mode = #tpu.pipeline_mode<synchronous>, transform_indices = @transform_1, window_bounds = array<i64: 128, 128>}, {pipeline_mode = #tpu.pipeline_mode<synchronous>, transform_indices = @transform_2, window_bounds = array<i64: 1, 128>}, {pipeline_mode = #tpu.pipeline_mode<synchronous>, transform_indices = @transform_3, window_bounds = array<i64: 1, 128>}, {transform_indices = @transform_4, window_bounds = array<i64: 1, 256, 128>}]} {
    %c0 = arith.constant 0 : index
    %c0_0 = arith.constant 0 : index
    %c0_1 = arith.constant 0 : index
    %0 = vector.load %arg2[%c0, %c0_0, %c0_1] : memref<1x256x128xf32, #tpu.memory_space<vmem>>, vector<1x256x128xf32>
    %1 = vector.shape_cast %0 : vector<1x256x128xf32> to vector<256x128xf32>
    %c0_2 = arith.constant 0 : index
    %c0_3 = arith.constant 0 : index
    %2 = vector.load %arg3[%c0_2, %c0_3] : memref<128x128xf32, #tpu.memory_space<vmem>>, vector<128x128xf32>
    %cst = arith.constant dense<0.000000e+00> : vector<256x128xf32>
    %3 = tpu.matmul %1, %2, %cst {dimension_numbers = #tpu.dot_dimension_numbers<[1], [0], [0], [1], [0, 0, 1, 1], [], []>} : vector<256x128xf32>, vector<128x128xf32>, vector<256x128xf32> -> vector<256x128xf32>
    %c0_4 = arith.constant 0 : index
    %c0_5 = arith.constant 0 : index
    %4 = vector.load %arg4[%c0_4, %c0_5] : memref<1x128xf32, #tpu.memory_space<vmem>>, vector<1x128xf32>
    %5 = vector.broadcast %4 : vector<1x128xf32> to vector<256x128xf32>
    %6 = arith.mulf %3, %5 : vector<256x128xf32>
    %c0_6 = arith.constant 0 : index
    %c0_7 = arith.constant 0 : index
    %7 = vector.load %arg5[%c0_6, %c0_7] : memref<1x128xf32, #tpu.memory_space<vmem>>, vector<1x128xf32>
    %8 = vector.broadcast %7 : vector<1x128xf32> to vector<256x128xf32>
    %9 = arith.addf %6, %8 : vector<256x128xf32>
    %10 = arith.negf %9 : vector<256x128xf32>
    %11 = math.exp %10 : vector<256x128xf32>
    %cst_8 = arith.constant 1.000000e+00 : f32
    %12 = vector.broadcast %cst_8 : f32 to vector<256x128xf32>
    %13 = arith.addf %12, %11 : vector<256x128xf32>
    %14 = arith.divf %12, %13 : vector<256x128xf32>
    %15 = arith.mulf %9, %14 : vector<256x128xf32>
    %c0_9 = arith.constant 0 : index
    %c0_10 = arith.constant 0 : index
    %c0_11 = arith.constant 0 : index
    %16 = vector.load %arg6[%c0_9, %c0_10, %c0_11] : memref<1x256x128xf32, #tpu.memory_space<vmem>>, vector<1x256x128xf32>
    %17 = vector.shape_cast %16 : vector<1x256x128xf32> to vector<256x128xf32>
    %18 = vector.shape_cast %15 : vector<256x128xf32> to vector<1x256x128xf32>
    tpu.vector_store %arg6[%c0_9, %c0_10, %c0_11], %18 {strides = array<i32>} : memref<1x256x128xf32, #tpu.memory_space<vmem>>, vector<1x256x128xf32>,
    return
  }
  func.func @transform_0(%arg0: i32, %arg1: i32) -> (i32, i32, i32) {
    %c0_i32 = arith.constant 0 : i32
    %c0_i32_0 = arith.constant 0 : i32
    return %arg0, %arg1, %c0_i32 : i32, i32, i32
  }
  func.func @transform_1(%arg0: i32, %arg1: i32) -> (i32, i32) {
    %c0_i32 = arith.constant 0 : i32
    %c0_i32_0 = arith.constant 0 : i32
    %c0_i32_1 = arith.constant 0 : i32
    return %c0_i32, %c0_i32_0 : i32, i32
  }
  func.func @transform_2(%arg0: i32, %arg1: i32) -> (i32, i32) {
    %c0_i32 = arith.constant 0 : i32
    %c0_i32_0 = arith.constant 0 : i32
    %c0_i32_1 = arith.constant 0 : i32
    return %c0_i32, %c0_i32_0 : i32, i32
  }
  func.func @transform_3(%arg0: i32, %arg1: i32) -> (i32, i32) {
    %c0_i32 = arith.constant 0 : i32
    %c0_i32_0 = arith.constant 0 : i32
    %c0_i32_1 = arith.constant 0 : i32
    return %c0_i32, %c0_i32_0 : i32, i32
  }
  func.func @transform_4(%arg0: i32, %arg1: i32) -> (i32, i32, i32) {
    %c0_i32 = arith.constant 0 : i32
    %c0_i32_0 = arith.constant 0 : i32
    return %arg0, %arg1, %c0_i32 : i32, i32, i32
  }
}

</mosaic_0001>

<bundles_post_ra>
// kernel: tpu_custom_call.1
= control target key start
LH: loop header
LB: loop body
LE: loop exit
PB: predicated region body
PF: predicated region fallthrough
CT: control target
= control target key end

     0   :  { %s2614_s0 = inlined_call_operand.hbm [shape: f32[2,256,128], index: 0, kind: input, shape index: {}]   ;;  %s2615_s1 = inlined_call_operand.hbm [shape: f32[128,128], index: 1, kind: input, shape index: {}]   ;;  %s2616_s2 = inlined_call_operand.vmem [shape: f32[1,128], index: 2, kind: input, shape index: {}]   ;;  %s2617_s3 = inlined_call_operand.vmem [shape: f32[1,128], index: 3, kind: input, shape index: {}]   ;;  %s2618_s4 = inlined_call_operand.hbm [shape: f32[2,256,128], index: 4, kind: output, shape index: {}]  }
   0x1   :  { %2622 = sst [smem:[#allocation12_spill]] %s2615_s1 }
   0x2   :  { %9 = vsyncpa [#allocation3], 0 }
   0x3   :  { %11 = vsyncpa [#allocation3 + $0x1], 0 }
   0x4   :  { %12 = vsyncpa [#allocation6], 0 }
   0x5   :  { %13 = vsyncpa [#allocation4], 0 }
   0x6   :  { %15 = vsyncpa [#allocation4 + $0x1], 0  ;;  %s1761_s15 = smov 0   ;;  %s1763_s16 = smov 0  }
   0x7   :  { %s1765_s17 = smov 0   ;;  %s1767_s18 = smov 0  }
   0x8   :  { %s1769_s19 = smov 0   ;;  %s1771_s20 = smov 0  }
   0x9 LB: > { %s1275_s21 = sadd.s32 4294967295, %s1729_s20   ;;  %s1276_s22 = sadd.s32 4294967294, %s1729_s20   ;;  %s1729_s20 = sphi %s1771_s20, %s21_s20   ;;  %s1725_s19 = sphi %s1769_s19, %s2685_s19   ;;  %s1721_s18 = sphi %s1767_s18, %s2684_s18   ;;  %s1717_s17 = sphi %s1765_s17, %s2683_s17   ;;  %s1713_s16 = sphi %s1763_s16, %s2682_s16   ;;  %s1709_s15 = sphi %s1761_s15, %s2681_s15  }
   0xa   : > { %p55_p0 = scmp.ne.s32.totalorder %s1713_s16, %s1709_s15  ;;  %p1795_p1 = scmp.eq.s32.totalorder %s1275_s21, 0 }
   0xb   : > { %p1799_p2 = scmp.eq.s32.totalorder %s1275_s21, 1  ;;  %p150_p3 = scmp.eq.s32.totalorder %s1276_s22, 1 }
   0xc   : > { %p1805_p4 = por %p1795_p1, %p55_p0  ;;  %p1277_p5 = scmp.ge.s32.totalorder %s1729_s20, 1 }
   0xd   : > { %p1810_p6 = por %p150_p3, %p55_p0  ;;  %p157_p7 = scmp.lt.s32.totalorder %s1729_s20, 3 }
   0xe   : > { %s2627_s1 = sld [smem:[#allocation12_spill]]  ;;  %s1731_s5 = smov [#allocation5]  }
   0xf   : > { %p1818_p8 = pnand %p1277_p5, %p157_p7  ;;  %s170_s6 = sshll.u32 %s1731_s5, 4  ;;  %s171_s6 = int_to_ptr.vmem [resolvable:$true] %s170_s6 }
  0x10   : > { %p1279_p11 = scmp.ge.s32.totalorder %s1729_s20, 2  ;;  %s2619_s7 = smov 128  }
  0x11   : > { %p1382_p9 = pneg %p1818_p8  ;;  %s2620_s8 = smov 8  }
  0x12   : > { %s33_s9 = sadd.s32 1, %s1725_s19  ;;  %s42_s10 = sadd.s32 1, %s1717_s17 }
  0x13   : > { %p1383_p10 = pnand %p1382_p9, %p1795_p1  ;;  %p35_p12 = scmp.ge.s32.totalorder %s33_s9, 2 }
  0x14   : > { %s168_s29 = sshll.u32 %s2627_s1, 4  ;;  %p49_p13 = scmp.ne.s32.totalorder %s1717_s17, %s1713_s16  ;;  %s169_s29 = int_to_ptr.hbm [resolvable:$true] %s168_s29 }
  0x15   : > { %1385 = dma.hbm_to_vmem [thread:$0]  (!%p1383_p10), %s169_s29, 2048, %s171_s6, [#allocation6], %s2619_s7, %s2619_s7, %s2620_s8  }
  0x16   : > { %p50_p0 = scmp.eq.s32.totalorder %s1729_s20, 0  ;;  %s2687_s9 = smov (%p35_p12, %s33_s9), 0 }
  0x17   : > { %2629 = sst [smem:[#allocation11_spill]] %s2687_s9  ;;  %p1843_p5 = por %p1799_p2, %p49_p13 }
  0x18   : > { %p1837_p3 = por %p50_p0, %p49_p13  ;;  %s37_s13 = ssub.s32 %s1725_s19, %s2687_s9 }
  0x19   : > { %p1395_p7 = scmp.lt.s32.totalorder %s1729_s20, 2  ;;  %p40_p9 = scmp.eq.s32.totalorder %s37_s13, 0 }
  0x1a   : > { %s190_s14 = sand.u32 1, %s1717_s17   ;;  %s1324_s27 = sshll.u32 %s1725_s19, 8 }
  0x1b   : > { %s1280_s21 = sshll.u32 %s190_s14, 8  ;;  %s201_s5 = scalar_lea.hbm %s2614_s0, %s1324_s27 }
  0x1c   : > { %s1852_s22 = scalar_select %p40_p9, %s1717_s17, %s42_s10  }
  0x1d   : > { %s194_s6 = scalar_lea.vmem [#allocation2], %s1280_s21  ;;  %s202_s24 = sshll.u32 %s201_s5, 4  ;;  %s203_s24 = int_to_ptr.hbm [resolvable:$true] %s202_s24 }
  0x1e   : > { %s204_s7 = sshll.u32 %s194_s6, 4  ;;  %p1387_p2 = pnand %p1395_p7, %p1837_p3  ;;  %s205_s7 = int_to_ptr.vmem [resolvable:$true] %s204_s7 }
  0x1f   : > { %s191_s8 = scalar_lea.sflag [#allocation3], %s190_s14  ;;  %s2632_s1 = smov 8  }
  0x20   : > { %s2633_s9 = smov 128   ;;  %216 = sbr.rel (%p1818_p8) target bundleno = 375 (0x177), region = 36 }
  0x21   : > { %1389 = dma.hbm_to_vmem [thread:$0]  (!%p1387_p2), %s203_s24, 4096, %s205_s7, %s191_s8, %s2633_s9, %s2633_s9, %s2632_s1  }
  0x22   : > { %s1866_s10 = sand.u32 (!%p1818_p8), 1, %s1713_s16  }
  0x23   : > { %s1284_s13 = sshll.u32 (!%p1818_p8), %s1866_s10, 8  ;;  %s219_s21 = scalar_lea.sflag (!%p1818_p8), [#allocation3], %s1866_s10 }
  0x24   : > { %s1872_s11 = scalar_lea.vmem (!%p1818_p8), [#allocation2], %s1284_s13 }
  0x25   : > { %1696 = dma.done.wait (%p1805_p4), %s219_s21, 4096  }
  0x26   : > { %1698 = vsyncadd (%p1805_p4), %s219_s21, 4294963200 }
  0x27   : > { %1700 = dma.done.wait (%p1795_p1), [#allocation6], 2048  }
  0x28   : > { %1702 = vsyncadd (%p1795_p1), [#allocation6], 4294965248  ;;  %v302_v0 = vld [vmem:[#allocation5 + $0x78] sm:$0xff]  ;;  %v301_v1 = vld [vmem:[#allocation5 + $0x70] sm:$0xff]  ;;  %s2028_s7 = scalar_lea.vmem [#allocation7], %s1284_s13  ;;  %s1325_s28 = sshll.u32 %s1721_s18, 8 }
  0x29   : > { %303 = vmatpush.msra.mxu0 %v302_v0  ;;  %1326 = vmatpush.msra.mxu1 %v302_v0  ;;  %v300_v2 = vld [vmem:[#allocation5 + $0x68] sm:$0xff]  ;;  %v299_v3 = vld [vmem:[#allocation5 + $0x60] sm:$0xff]  ;;  %v298_v4 = vld [vmem:[#allocation5 + $0x58] sm:$0xff]  ;;  %s1174_s6 = scalar_lea.hbm %s2618_s4, %s1325_s28  ;;  %s1175_s24 = sshll.u32 %s2028_s7, 4  ;;  %s1176_s24 = int_to_ptr.vmem [resolvable:$true] %s1175_s24 }
  0x2a   : > { %1327 = vmatpush.msra.mxu2 %v302_v0  ;;  %1328 = vmatpush.msra.mxu3 %v302_v0  ;;  %v297_v5 = vld [vmem:[#allocation5 + $0x50] sm:$0xff]  ;;  %v296_v6 = vld [vmem:[#allocation5 + $0x48] sm:$0xff]  ;;  %v295_v7 = vld [vmem:[#allocation5 + $0x40] sm:$0xff]  ;;  %s1177_s18 = sshll.u32 %s1174_s6, 4  ;;  %s1161_s13 = scalar_lea.sflag [#allocation4], %s1866_s10  ;;  %s1178_s18 = int_to_ptr.hbm [resolvable:$true] %s1177_s18 }
  0x2b   : > { %304 = vmatpush.msra.mxu0 %v301_v1  ;;  %1329 = vmatpush.msra.mxu1 %v301_v1  ;;  %v294_v8 = vld [vmem:[#allocation5 + $0x38] sm:$0xff]  ;;  %v293_v9 = vld [vmem:[#allocation5 + $0x30] sm:$0xff]  ;;  %v292_v10 = vld [vmem:[#allocation5 + $0x28] sm:$0xff]  ;;  %s1657_s21 = sshra.s32 %s1178_s18, 4  ;;  %s1663_s25 = scalar_lea.hbm %s2618_s4, 512  ;;  %s1658_s21 = int_to_ptr.hbm [resolvable:$true] %s1657_s21 }
  0x2c   : > { %1330 = vmatpush.msra.mxu2 %v301_v1  ;;  %1331 = vmatpush.msra.mxu3 %v301_v1  ;;  %v291_v11 = vld [vmem:[#allocation5 + $0x20] sm:$0xff]  ;;  %v290_v12 = vld [vmem:[#allocation5 + $0x18] sm:$0xff]  ;;  %v289_v13 = vld [vmem:[#allocation5 + $0x10] sm:$0xff]  ;;  %p1664_p10 = scmp.lt.s32.totalorder %s1658_s21, %s2618_s4 }
  0x2d   : > { %305 = vmatpush.msra.mxu0 %v300_v2  ;;  %1332 = vmatpush.msra.mxu1 %v300_v2  ;;  %v288_v14 = vld [vmem:[#allocation5 + $0x8] sm:$0xff]  ;;  %v287_v15 = vld [vmem:[#allocation5] sm:$0xff]  ;;  %v257_v24 = vld [vmem:[%s1872_s11 + $0x10] sm:$0xff] }
  0x2e   : > { %1333 = vmatpush.msra.mxu2 %v300_v2  ;;  %1334 = vmatpush.msra.mxu3 %v300_v2  ;;  %v255_v16 = vld [vmem:[%s1872_s11] sm:$0xff]  ;;  %v256_v20 = vld [vmem:[%s1872_s11 + $0x8] sm:$0xff]  ;;  %v265_v25 = vld [vmem:[%s1872_s11 + $0x50] sm:$0xff] }
  0x2f   : > { %306 = vmatpush.msra.mxu0 %v299_v3  ;;  %1335 = vmatpush.msra.mxu1 %v299_v3  ;;  %v263_v17 = vld [vmem:[%s1872_s11 + $0x40] sm:$0xff]  ;;  %v264_v21 = vld [vmem:[%s1872_s11 + $0x48] sm:$0xff]  ;;  %v273_v26 = vld [vmem:[%s1872_s11 + $0x90] sm:$0xff] }
  0x30   : > { %1336 = vmatpush.msra.mxu2 %v299_v3  ;;  %1337 = vmatpush.msra.mxu3 %v299_v3  ;;  %v271_v18 = vld [vmem:[%s1872_s11 + $0x80] sm:$0xff]  ;;  %v272_v22 = vld [vmem:[%s1872_s11 + $0x88] sm:$0xff]  ;;  %v281_v27 = vld [vmem:[%s1872_s11 + $0xd0] sm:$0xff] }
  0x31   : > { %307 = vmatpush.msra.mxu0 %v298_v4  ;;  %1338 = vmatpush.msra.mxu1 %v298_v4  ;;  %v279_v19 = vld [vmem:[%s1872_s11 + $0xc0] sm:$0xff]  ;;  %v280_v23 = vld [vmem:[%s1872_s11 + $0xc8] sm:$0xff]  ;;  %v258_v28 = vld [vmem:[%s1872_s11 + $0x18] sm:$0xff] }
  0x32   : > { %1339 = vmatpush.msra.mxu2 %v298_v4  ;;  %1340 = vmatpush.msra.mxu3 %v298_v4  ;;  %v266_v29 = vld [vmem:[%s1872_s11 + $0x58] sm:$0xff]  ;;  %v259_v32 = vld [vmem:[%s1872_s11 + $0x20] sm:$0xff]  ;;  %v260_v36 = vld [vmem:[%s1872_s11 + $0x28] sm:$0xff] }
  0x33   : > { %308 = vmatpush.msra.mxu0 %v297_v5  ;;  %1341 = vmatpush.msra.mxu1 %v297_v5  ;;  %v274_v30 = vld [vmem:[%s1872_s11 + $0x98] sm:$0xff]  ;;  %v267_v33 = vld [vmem:[%s1872_s11 + $0x60] sm:$0xff]  ;;  %v268_v37 = vld [vmem:[%s1872_s11 + $0x68] sm:$0xff] }
  0x34   : > { %1342 = vmatpush.msra.mxu2 %v297_v5  ;;  %1343 = vmatpush.msra.mxu3 %v297_v5  ;;  %v282_v31 = vld [vmem:[%s1872_s11 + $0xd8] sm:$0xff]  ;;  %v275_v34 = vld [vmem:[%s1872_s11 + $0xa0] sm:$0xff]  ;;  %v276_v38 = vld [vmem:[%s1872_s11 + $0xa8] sm:$0xff] }
  0x35   : > { %309 = vmatpush.msra.mxu0 %v296_v6  ;;  %1344 = vmatpush.msra.mxu1 %v296_v6  ;;  %v283_v35 = vld [vmem:[%s1872_s11 + $0xe0] sm:$0xff]  ;;  %v284_v39 = vld [vmem:[%s1872_s11 + $0xe8] sm:$0xff]  ;;  %v261_v40 = vld [vmem:[%s1872_s11 + $0x30] sm:$0xff] }
  0x36   : > { %1345 = vmatpush.msra.mxu2 %v296_v6  ;;  %1346 = vmatpush.msra.mxu3 %v296_v6  ;;  %v269_v41 = vld [vmem:[%s1872_s11 + $0x70] sm:$0xff]  ;;  %v262_v44 = vld [vmem:[%s1872_s11 + $0x38] sm:$0xff]  ;;  %v1917_v48 = vld [vmem:[%s2616_s2] ss:$0 sm:$0xff] }
  0x37   : > { %310 = vmatpush.msra.mxu0 %v295_v7  ;;  %1347 = vmatpush.msra.mxu1 %v295_v7  ;;  %v277_v42 = vld [vmem:[%s1872_s11 + $0xb0] sm:$0xff]  ;;  %v270_v45 = vld [vmem:[%s1872_s11 + $0x78] sm:$0xff]  ;;  %v1922_v49 = vld [vmem:[%s2617_s3] ss:$0 sm:$0xff] }
  0x38   : > { %1348 = vmatpush.msra.mxu2 %v295_v7  ;;  %1349 = vmatpush.msra.mxu3 %v295_v7  ;;  %v285_v43 = vld [vmem:[%s1872_s11 + $0xf0] sm:$0xff]  ;;  %v278_v46 = vld [vmem:[%s1872_s11 + $0xb8] sm:$0xff] }
  0x39   : > { %311 = vmatpush.msra.mxu0 %v294_v8  ;;  %1350 = vmatpush.msra.mxu1 %v294_v8  ;;  %v286_v47 = vld [vmem:[%s1872_s11 + $0xf8] sm:$0xff]  ;;  %s1659_s11 = scalar_lea.hbm %s1658_s21, 256 }
  0x3a   : > { %1351 = vmatpush.msra.mxu2 %v294_v8  ;;  %1352 = vmatpush.msra.mxu3 %v294_v8  ;;  %p1660_p1 = scmp.ne.s32.totalorder %s1658_s21, %s1659_s11  ;;  %p1665_p12 = scmp.lt.s32.totalorder %s1663_s25, %s1659_s11 }
  0x3b   : > { %312 = vmatpush.msra.mxu0 %v293_v9  ;;  %1353 = vmatpush.msra.mxu1 %v293_v9 }
  0x3c   : > { %1354 = vmatpush.msra.mxu2 %v293_v9  ;;  %1355 = vmatpush.msra.mxu3 %v293_v9  ;;  %p1661_p4 = pnand %p1660_p1, %p1843_p5  ;;  %p1666_p13 = por %p1665_p12, %p1664_p10 }
  0x3d   : > { %313 = vmatpush.msra.mxu0 %v292_v10  ;;  %1356 = vmatpush.msra.mxu1 %v292_v10 }
  0x3e   : > { %1357 = vmatpush.msra.mxu2 %v292_v10  ;;  %1358 = vmatpush.msra.mxu3 %v292_v10  ;;  %p1662_p8 = pneg %p1661_p4 }
  0x3f   : > { %314 = vmatpush.msra.mxu0 %v291_v11  ;;  %1359 = vmatpush.msra.mxu1 %v291_v11 }
  0x40   : > { %1360 = vmatpush.msra.mxu2 %v291_v11  ;;  %1361 = vmatpush.msra.mxu3 %v291_v11  ;;  %p1667_p0 = pnand %p1666_p13, %p1662_p8 }
  0x41   : > { %315 = vmatpush.msra.mxu0 %v290_v12  ;;  %1362 = vmatpush.msra.mxu1 %v290_v12 }
  0x42   : > { %1363 = vmatpush.msra.mxu2 %v290_v12  ;;  %1364 = vmatpush.msra.mxu3 %v290_v12 }
  0x43   : > { %316 = vmatpush.msra.mxu0 %v289_v13  ;;  %1365 = vmatpush.msra.mxu1 %v289_v13 }
  0x44   : > { %1366 = vmatpush.msra.mxu2 %v289_v13  ;;  %1367 = vmatpush.msra.mxu3 %v289_v13 }
  0x45   : > { %317 = vmatpush.msra.mxu0 %v288_v14  ;;  %1368 = vmatpush.msra.mxu1 %v288_v14 }
  0x46   : > { %1369 = vmatpush.msra.mxu2 %v288_v14  ;;  %1370 = vmatpush.msra.mxu3 %v288_v14 }
  0x47   : > { %318 = vmatpush.msra.mxu0 %v287_v15  ;;  %1371 = vmatpush.msra.mxu1 %v287_v15 }
  0x48   : > { %1372 = vmatpush.msra.mxu2 %v287_v15  ;;  %1373 = vmatpush.msra.mxu3 %v287_v15 }
  0x49   : > { %319 = vmatmul.f32.vlgmr.msra.gmra.mxu0 %v255_v16  ;;  %343 = vmatmul.f32.vlgmr.msra.gmra.mxu1 %v263_v17 }
  0x4a   : > { %367 = vmatmul.f32.vlgmr.msra.gmra.mxu2 %v271_v18  ;;  %391 = vmatmul.f32.vlgmr.msra.gmra.mxu3 %v279_v19 }
  0x51   : > { %322 = vmatmul.f32.gmra.mxu0 %v256_v20  ;;  %346 = vmatmul.f32.gmra.mxu1 %v264_v21 }
  0x52   : > { %370 = vmatmul.f32.gmra.mxu2 %v272_v22  ;;  %394 = vmatmul.f32.gmra.mxu3 %v280_v23 }
  0x59   : > { %325 = vmatmul.f32.gmra.mxu0 %v257_v24  ;;  %349 = vmatmul.f32.gmra.mxu1 %v265_v25 }
  0x5a   : > { %373 = vmatmul.f32.gmra.mxu2 %v273_v26  ;;  %397 = vmatmul.f32.gmra.mxu3 %v281_v27 }
  0x61   : > { %328 = vmatmul.f32.gmra.mxu0 %v258_v28  ;;  %352 = vmatmul.f32.gmra.mxu1 %v266_v29 }
  0x62   : > { %376 = vmatmul.f32.gmra.mxu2 %v274_v30  ;;  %400 = vmatmul.f32.gmra.mxu3 %v282_v31 }
  0x69   : > { %331 = vmatmul.f32.gmra.mxu0 %v259_v32  ;;  %355 = vmatmul.f32.gmra.mxu1 %v267_v33 }
  0x6a   : > { %379 = vmatmul.f32.gmra.mxu2 %v275_v34  ;;  %403 = vmatmul.f32.gmra.mxu3 %v283_v35 }
  0x71   : > { %334 = vmatmul.f32.gmra.mxu0 %v260_v36  ;;  %358 = vmatmul.f32.gmra.mxu1 %v268_v37 }
  0x72   : > { %382 = vmatmul.f32.gmra.mxu2 %v276_v38  ;;  %406 = vmatmul.f32.gmra.mxu3 %v284_v39 }
  0x79   : > { %337 = vmatmul.f32.gmra.mxu0 %v261_v40  ;;  %361 = vmatmul.f32.gmra.mxu1 %v269_v41 }
  0x7a   : > { %385 = vmatmul.f32.gmra.mxu2 %v277_v42  ;;  %409 = vmatmul.f32.gmra.mxu3 %v285_v43 }
  0x81   : > { %340 = vmatmul.f32.gmra.mxu0 %v262_v44  ;;  %364 = vmatmul.f32.gmra.mxu1 %v270_v45 }
  0x82   : > { %388 = vmatmul.f32.gmra.mxu2 %v278_v46  ;;  %412 = vmatmul.f32.gmra.mxu3 %v286_v47 }
  0xc6   : > { %v320_v50 = vpop.f32.mrf.mxu0  ;;  %v344_v51 = vpop.f32.mrf.mxu1 }
  0xc7   : > { %v420_v52 = vmul.f32 %v1917_v48, %v320_v50  ;;  %v428_v53 = vmul.f32 %v1917_v48, %v344_v51 }
  0xc9   : > { %v1927_v54 = vadd.f32 %v1922_v49, %v420_v52  ;;  %v1930_v55 = vadd.f32 %v1922_v49, %v428_v53 }
  0xcb   : > { %v1287_v56 = vmul.f32 -1.442695, %v1927_v54  ;;  %v1295_v57 = vmul.f32 -1.442695, %v1930_v55 }
  0xcd   : > { %1453 = vpow2.f32 %v1287_v56  ;;  %v368_v58 = vpop.f32.mrf.mxu2  ;;  %v392_v59 = vpop.f32.mrf.mxu3 }
  0xce   : > { %1455 = vpow2.f32 %v1295_v57  ;;  %v436_v60 = vmul.f32 %v1917_v48, %v368_v58  ;;  %v444_v61 = vmul.f32 %v1917_v48, %v392_v59  ;;  %v323_v62 = vpop.f32.mrf.mxu0  ;;  %v347_v63 = vpop.f32.mrf.mxu1 }
  0xcf   : > { %v421_v0 = vmul.f32 %v1917_v48, %v323_v62  ;;  %v429_v1 = vmul.f32 %v1917_v48, %v347_v63 }
  0xd0   : > { %v1939_v2 = vadd.f32 %v1922_v49, %v436_v60  ;;  %v1942_v3 = vadd.f32 %v1922_v49, %v444_v61 }
  0xd1   : > { %v1945_v4 = vadd.f32 %v1922_v49, %v421_v0  ;;  %v1948_v5 = vadd.f32 %v1922_v49, %v429_v1 }
  0xd2   : > { %v1303_v6 = vmul.f32 -1.442695, %v1939_v2  ;;  %v1311_v7 = vmul.f32 -1.442695, %v1942_v3 }
  0xd3   : > { %v1454_v8 = vpop.eup %1453  ;;  %v1288_v11 = vmul.f32 -1.442695, %v1945_v4  ;;  %v1296_v13 = vmul.f32 -1.442695, %v1948_v5 }
  0xd4   : > { %v1456_v9 = vpop.eup %1455  ;;  %v584_v10 = vadd.f32 1.0, %v1454_v8  ;;  %1457 = vpow2.f32 %v1303_v6 }
  0xd5   : > { %v1953_v12 = vadd.f32 1.0, %v1456_v9  ;;  %1459 = vpow2.f32 %v1311_v7  ;;  %v371_v14 = vpop.f32.mrf.mxu2  ;;  %v395_v16 = vpop.f32.mrf.mxu3 }
  0xd6   : > { %1461 = vrcp.f32 %v584_v10  ;;  %v437_v15 = vmul.f32 %v1917_v48, %v371_v14  ;;  %v625_v17 = vand.u32 2147483647, %v584_v10  ;;  %v627_v18 = vand.u32 2147483648, %v584_v10  ;;  %v326_v19 = vpop.f32.mrf.mxu0  ;;  %v350_v27 = vpop.f32.mrf.mxu1 }
  0xd7   : > { %1463 = vrcp.f32 %v1953_v12  ;;  %v745_v21 = vand.u32 2147483647, %v1953_v12  ;;  %v747_v24 = vand.u32 2147483648, %v1953_v12  ;;  %v445_v26 = vmul.f32 %v1917_v48, %v395_v16 }
  0xd8   : > { %1465 = vpow2.f32 %v1288_v11  ;;  %v1960_v22 = vadd.f32 %v1922_v49, %v437_v15  ;;  %vm621_vm0 = vweird.f32 %v584_v10  ;;  %vm741_vm1 = vweird.f32 %v1953_v12 }
  0xd9   : > { %1467 = vpow2.f32 %v1296_v13  ;;  %v422_v30 = vmul.f32 %v1917_v48, %v326_v19  ;;  %vm1970_vm2 = vcmp.eq.f32.partialorder %v625_v17, 8.507059e+37  ;;  %v628_v34 = vor.u32 1.1754944e-38, %v627_v18 }
  0xda   : > { %v1458_v20 = vpop.eup %1457  ;;  %vm1976_vm3 = vcmp.eq.f32.partialorder %v745_v21, 8.507059e+37  ;;  %v1304_v38 = vmul.f32 -1.442695, %v1960_v22  ;;  %v430_v39 = vmul.f32 %v1917_v48, %v350_v27  ;;  %v748_v42 = vor.u32 1.1754944e-38, %v747_v24 }
  0xdb   : > { %v1460_v23 = vpop.eup %1459  ;;  %v1963_v25 = vadd.f32 1.0, %v1458_v20  ;;  %v1984_v43 = vadd.f32 %v1922_v49, %v445_v26  ;;  %v1989_v47 = vadd.f32 %v1922_v49, %v422_v30 }
  0xdc   : > { %v1462_v28 = vpop.eup %1461  ;;  %v1967_v29 = vadd.f32 1.0, %v1460_v23  ;;  %v1996_v56 = vadd.f32 %v1922_v49, %v430_v39 }
  0xdd   : > { %v1464_v31 = vpop.eup %1463  ;;  %v617_v32 = vmul.f32 %v1462_v28, %v584_v10  ;;  %1469 = vrcp.f32 %v1963_v25  ;;  %v865_v45 = vand.u32 2147483647, %v1963_v25  ;;  %v867_v46 = vand.u32 2147483648, %v1963_v25 }
  0xde   : > { %v1466_v35 = vpop.eup %1465  ;;  %v737_v36 = vmul.f32 %v1464_v31, %v1953_v12  ;;  %1471 = vrcp.f32 %v1967_v29  ;;  %vm622_vm4 = vweird.f32 %v1462_v28  ;;  %vm742_vm5 = vweird.f32 %v1464_v31 }
  0xdf   : > { %v1468_v40 = vpop.eup %1467  ;;  %v618_v41 = vsub.f32 1.0, %v617_v32  ;;  %v1991_v51 = vadd.f32 1.0, %v1466_v35  ;;  %1473 = vpow2.f32 %v1304_v38  ;;  %vm861_vm6 = vweird.f32 %v1963_v25  ;;  %vm623_vm7 = vmor %vm621_vm0, %vm622_vm4 }
  0xe0   : > { %v738_v44 = vsub.f32 1.0, %v737_v36  ;;  %v1993_v52 = vadd.f32 1.0, %v1468_v40  ;;  %v985_v59 = vand.u32 2147483647, %v1967_v29  ;;  %vm2003_vm8 = vcmp.eq.f32.partialorder %v865_v45, 8.507059e+37  ;;  %vm743_vm10 = vmor %vm741_vm1, %vm742_vm5 }
  0xe1   : > { %v619_v50 = vmul.f32 %v1462_v28, %v618_v41  ;;  %1475 = vrcp.f32 %v1991_v51  ;;  %v868_v63 = vor.u32 1.1754944e-38, %v867_v46  ;;  %vm981_vm9 = vweird.f32 %v1967_v29  ;;  %v374_v41 = vpop.f32.mrf.mxu2 }
  0xe2   : > { %v739_v53 = vmul.f32 %v1464_v31, %v738_v44  ;;  %v987_v6 = vand.u32 2147483648, %v1967_v29  ;;  %1477 = vrcp.f32 %v1993_v52  ;;  %v1312_v7 = vmul.f32 -1.442695, %v1984_v43 }
  0xe3   : > { %v1470_v57 = vpop.eup %1469  ;;  %v620_v58 = vadd.f32 %v1462_v28, %v619_v50  ;;  %vm2020_vm11 = vcmp.eq.f32.partialorder %v985_v59, 8.507059e+37  ;;  %v640_v15 = vand.u32 2147483647, %v1991_v51  ;;  %vm636_vm13 = vweird.f32 %v1991_v51 }
  0xe4   : > { %v740_v60 = vadd.f32 %v1464_v31, %v739_v53  ;;  %v857_v61 = vmul.f32 %v1470_v57, %v1963_v25  ;;  %v1472_v0 = vpop.eup %1471  ;;  %vm862_vm12 = vweird.f32 %v1470_v57  ;;  %1479 = vpow2.f32 %v1312_v7  ;;  %v329_v53 = vpop.f32.mrf.mxu0 }
  0xe5   : > { %v624_v1 = vsel %vm623_vm7, %v1462_v28, %v620_v58  ;;  %v977_v11 = vmul.f32 %v1472_v0, %v1967_v29  ;;  %v1474_v16 = vpop.eup %1473  ;;  %vm982_vm14 = vweird.f32 %v1472_v0  ;;  %vm863_vm15 = vmor %vm861_vm6, %vm862_vm12  ;;  %vm2039_vm0 = vcmp.eq.f32.partialorder %v640_v15, 8.507059e+37 }
  0xe6   : > { %v629_v8 = vsel %vm1970_vm2, %v628_v34, %v624_v1  ;;  %v744_v9 = vsel %vm743_vm10, %v1464_v31, %v740_v60  ;;  %v858_v10 = vsub.f32 1.0, %v857_v61  ;;  %v2032_v21 = vadd.f32 1.0, %v1474_v16  ;;  %vm983_vm1 = vmor %vm981_vm9, %vm982_vm14 }
  0xe7   : > { %v1096_v13 = vmul.f32 %v629_v8, %v1927_v54  ;;  %v749_v12 = vsel %vm1976_vm3, %v748_v42, %v744_v9  ;;  %v978_v19 = vsub.f32 1.0, %v977_v11  ;;  %v1476_v20 = vpop.eup %1475  ;;  %v988_v54 = vor.u32 1.1754944e-38, %v987_v6  ;;  %v353_v11 = vpop.f32.mrf.mxu1 }
  0xe8   : > { %v1104_v17 = vmul.f32 %v749_v12, %v1930_v55  ;;  %v859_v18 = vmul.f32 %v1470_v57, %v858_v10  ;;  %v632_v55 = vmul.f32 %v1476_v20, %v1991_v51  ;;  %v1478_v26 = vpop.eup %1477  ;;  %v642_v28 = vand.u32 2147483648, %v1991_v51 }
  0xe9   : > { %1128 = vst [vmem:[%s2028_s7] sm:$0xff] %v1096_v13  ;;  %v979_v24 = vmul.f32 %v1472_v0, %v978_v19  ;;  %1481 = vrcp.f32 %v2032_v21  ;;  %v1289_v30 = vmul.f32 -1.442695, %v1989_v47  ;;  %v752_v34 = vmul.f32 %v1478_v26, %v1993_v52 }
  0xea   : > { %1136 = vst [vmem:[%s2028_s7 + $0x40] sm:$0xff] %v1104_v17  ;;  %v860_v23 = vadd.f32 %v1470_v57, %v859_v18  ;;  %v633_v33 = vsub.f32 1.0, %v632_v55  ;;  %vm637_vm2 = vweird.f32 %v1476_v20  ;;  %v760_v35 = vand.u32 2147483647, %v1993_v52  ;;  %v1480_v42 = vpop.eup %1479 }
  0xeb   : > { %v980_v32 = vadd.f32 %v1472_v0, %v979_v24  ;;  %v762_v36 = vand.u32 2147483648, %v1993_v52  ;;  %v753_v40 = vsub.f32 1.0, %v752_v34  ;;  %vm756_vm3 = vweird.f32 %v1993_v52  ;;  %vm638_vm5 = vmor %vm636_vm13, %vm637_vm2  ;;  %v377_v34 = vpop.f32.mrf.mxu2 }
  0xec   : > { %v864_v31 = vsel %vm863_vm15, %v1470_v57, %v860_v23  ;;  %v634_v39 = vmul.f32 %v1476_v20, %v633_v33  ;;  %vm757_vm4 = vweird.f32 %v1478_v26  ;;  %1483 = vpow2.f32 %v1289_v30 }
  0xed   : > { %v869_v25 = vsel %vm2003_vm8, %v868_v63, %v864_v31  ;;  %v984_v38 = vsel %vm983_vm1, %v1472_v0, %v980_v32  ;;  %v754_v46 = vmul.f32 %v1478_v26, %v753_v40  ;;  %v2059_v50 = vadd.f32 1.0, %v1480_v42  ;;  %vm758_vm7 = vmor %vm756_vm3, %vm757_vm4 }
  0xee   : > { %v1112_v37 = vmul.f32 %v869_v25, %v1939_v2  ;;  %v989_v44 = vsel %vm2020_vm11, %v988_v54, %v984_v38  ;;  %v635_v45 = vadd.f32 %v1476_v20, %v634_v39  ;;  %v398_v2 = vpop.f32.mrf.mxu3  ;;  %v643_v58 = vor.u32 1.1754944e-38, %v642_v28 }
  0xef   : > { %v1120_v29 = vmul.f32 %v989_v44, %v1942_v3  ;;  %v1482_v57 = vpop.eup %1481  ;;  %vm2064_vm6 = vcmp.eq.f32.partialorder %v760_v35, 8.507059e+37  ;;  %v1297_v60 = vmul.f32 -1.442695, %v1996_v56  ;;  %v438_v3 = vmul.f32 %v1917_v48, %v374_v41 }
  0xf0   : > { %1144 = vst [vmem:[%s2028_s7 + $0x80] sm:$0xff] %v1112_v37  ;;  %v639_v61 = vsel %vm638_vm5, %v1476_v20, %v635_v45  ;;  %v755_v62 = vadd.f32 %v1478_v26, %v754_v46  ;;  %v763_v63 = vor.u32 1.1754944e-38, %v762_v36  ;;  %v872_v0 = vmul.f32 %v1482_v57, %v2032_v21  ;;  %v332_v46 = vpop.f32.mrf.mxu0 }
  0xf1   : > { %1152 = vst [vmem:[%s2028_s7 + $0xc0] sm:$0xff] %v1120_v29  ;;  %v644_v51 = vsel %vm2039_vm0, %v643_v58, %v639_v61  ;;  %1485 = vrcp.f32 %v2059_v50  ;;  %v446_v1 = vmul.f32 %v1917_v48, %v398_v2  ;;  %v423_v6 = vmul.f32 %v1917_v48, %v329_v53 }
  0xf2   : > { %v1097_v7 = vmul.f32 %v644_v51, %v1945_v4  ;;  %v759_v8 = vsel %vm758_vm7, %v1478_v26, %v755_v62  ;;  %v873_v9 = vsub.f32 1.0, %v872_v0  ;;  %v882_v10 = vand.u32 2147483648, %v2032_v21  ;;  %v1484_v13 = vpop.eup %1483 }
  0xf3   : > { %v764_v12 = vsel %vm2064_vm6, %v763_v63, %v759_v8  ;;  %v880_v52 = vand.u32 2147483647, %v2032_v21  ;;  %1487 = vpow2.f32 %v1297_v60  ;;  %v2086_v14 = vadd.f32 %v1922_v49, %v438_v3  ;;  %v380_v53 = vpop.f32.mrf.mxu2 }
  0xf4   : > { %1129 = vst [vmem:[%s2028_s7 + $0x8] sm:$0xff] %v1097_v7  ;;  %v1105_v15 = vmul.f32 %v764_v12, %v1948_v5  ;;  %v874_v4 = vmul.f32 %v1482_v57, %v873_v9  ;;  %vm877_vm8 = vweird.f32 %v1482_v57  ;;  %v2090_v16 = vadd.f32 1.0, %v1484_v13 }
  0xf5   : > { %v1305_v17 = vmul.f32 -1.442695, %v2086_v14  ;;  %v2094_v18 = vadd.f32 %v1922_v49, %v446_v1  ;;  %v2097_v19 = vadd.f32 %v1922_v49, %v423_v6  ;;  %v431_v20 = vmul.f32 %v1917_v48, %v353_v11 }
  0xf6   : > { %1137 = vst [vmem:[%s2028_s7 + $0x48] sm:$0xff] %v1105_v15  ;;  %v875_v54 = vadd.f32 %v1482_v57, %v874_v4  ;;  %vm876_vm9 = vweird.f32 %v2032_v21  ;;  %v883_v23 = vor.u32 1.1754944e-38, %v882_v10  ;;  %1489 = vrcp.f32 %v2090_v16  ;;  %v401_v39 = vpop.f32.mrf.mxu3 }
  0xf7   : > { %v1486_v5 = vpop.eup %1485  ;;  %vm878_vm10 = vmor %vm876_vm9, %vm877_vm8  ;;  %v1000_v24 = vand.u32 2147483647, %v2059_v50  ;;  %1491 = vpow2.f32 %v1305_v17  ;;  %v1313_v55 = vmul.f32 -1.442695, %v2094_v18  ;;  %v1290_v26 = vmul.f32 -1.442695, %v2097_v19 }
  0xf8   : > { %v879_v27 = vsel %vm878_vm10, %v1482_v57, %v875_v54  ;;  %vm881_vm11 = vcmp.eq.f32.partialorder %v880_v52, 8.507059e+37  ;;  %v992_v28 = vmul.f32 %v1486_v5, %v2059_v50  ;;  %v1002_v30 = vand.u32 2147483648, %v2059_v50 }
  0xf9   : > { %v1488_v21 = vpop.eup %1487  ;;  %v884_v31 = vsel %vm881_vm11, %v883_v23, %v879_v27  ;;  %v655_v32 = vand.u32 2147483647, %v2090_v16  ;;  %1493 = vpow2.f32 %v1313_v55  ;;  %v2110_v33 = vadd.f32 %v1922_v49, %v431_v20 }
  0xfa   : > { %v1113_v25 = vmul.f32 %v884_v31, %v1960_v22  ;;  %v993_v35 = vsub.f32 1.0, %v992_v28  ;;  %v2113_v36 = vadd.f32 1.0, %v1488_v21  ;;  %1495 = vpow2.f32 %v1290_v26 }
  0xfb   : > { %vm996_vm12 = vweird.f32 %v2059_v50  ;;  %vm2116_vm13 = vcmp.eq.f32.partialorder %v1000_v24, 8.507059e+37  ;;  %v1298_v38 = vmul.f32 -1.442695, %v2110_v33  ;;  %vm997_vm14 = vweird.f32 %v1486_v5 }
  0xfc   : > { %v1490_v40 = vpop.eup %1489  ;;  %1145 = vst [vmem:[%s2028_s7 + $0x88] sm:$0xff] %v1113_v25  ;;  %v994_v41 = vmul.f32 %v1486_v5, %v993_v35  ;;  %1497 = vrcp.f32 %v2113_v36  ;;  %v439_v22 = vmul.f32 %v1917_v48, %v377_v34  ;;  %v1003_v44 = vor.u32 1.1754944e-38, %v1002_v30  ;;  %vm998_vm1 = vmor %vm996_vm12, %vm997_vm14 }
  0xfd   : > { %v1492_v42 = vpop.eup %1491  ;;  %v647_v29 = vmul.f32 %v1490_v40, %v2090_v16  ;;  %vm651_vm15 = vweird.f32 %v2090_v16  ;;  %v657_v45 = vand.u32 2147483648, %v2090_v16  ;;  %vm2127_vm0 = vcmp.eq.f32.partialorder %v655_v32, 8.507059e+37 }
  0xfe   : > { %v995_v2 = vadd.f32 %v1486_v5, %v994_v41  ;;  %v2131_v57 = vadd.f32 1.0, %v1492_v42  ;;  %v447_v58 = vmul.f32 %v1917_v48, %v401_v39  ;;  %v775_v3 = vand.u32 2147483647, %v2113_v36 }
  0xff   : > { %v1494_v59 = vpop.eup %1493  ;;  %v648_v60 = vsub.f32 1.0, %v647_v29  ;;  %v777_v61 = vand.u32 2147483648, %v2113_v36  ;;  %1499 = vpow2.f32 %v1298_v38  ;;  %v2140_v0 = vadd.f32 %v1922_v49, %v439_v22 }
 0x100   : > { %v1496_v62 = vpop.eup %1495  ;;  %v999_v63 = vsel %vm998_vm1, %v1486_v5, %v995_v2  ;;  %1501 = vrcp.f32 %v2131_v57  ;;  %v424_v51 = vmul.f32 %v1917_v48, %v332_v46  ;;  %vm652_vm2 = vweird.f32 %v1490_v40 }
 0x101   : > { %v1004_v50 = vsel %vm2116_vm13, %v1003_v44, %v999_v63  ;;  %v649_v1 = vmul.f32 %v1490_v40, %v648_v60  ;;  %v2145_v6 = vadd.f32 1.0, %v1494_v59  ;;  %v658_v9 = vor.u32 1.1754944e-38, %v657_v45  ;;  %vm653_vm5 = vmor %vm651_vm15, %vm652_vm2  ;;  %v356_v44 = vpop.f32.mrf.mxu1 }
 0x102   : > { %v1498_v7 = vpop.eup %1497  ;;  %v1121_v8 = vmul.f32 %v1004_v50, %v1984_v43  ;;  %vm771_vm3 = vweird.f32 %v2113_v36  ;;  %v2149_v10 = vadd.f32 1.0, %v1496_v62  ;;  %vm2152_vm4 = vcmp.eq.f32.partialorder %v775_v3, 8.507059e+37 }
 0x103   : > { %v650_v11 = vadd.f32 %v1490_v40, %v649_v1  ;;  %v767_v13 = vmul.f32 %v1498_v7, %v2113_v36  ;;  %v778_v52 = vor.u32 1.1754944e-38, %v777_v61  ;;  %v2157_v15 = vadd.f32 %v1922_v49, %v447_v58 }
 0x104   : > { %1153 = vst [vmem:[%s2028_s7 + $0xc8] sm:$0xff] %v1121_v8  ;;  %v895_v43 = vand.u32 2147483647, %v2131_v57  ;;  %1503 = vrcp.f32 %v2145_v6  ;;  %v1306_v4 = vmul.f32 -1.442695, %v2140_v0  ;;  %v2166_v17 = vadd.f32 %v1922_v49, %v424_v51 }
 0x105   : > { %v1500_v20 = vpop.eup %1499  ;;  %v654_v54 = vsel %vm653_vm5, %v1490_v40, %v650_v11  ;;  %v768_v23 = vsub.f32 1.0, %v767_v13  ;;  %v897_v5 = vand.u32 2147483648, %v2131_v57  ;;  %1505 = vrcp.f32 %v2149_v10 }
 0x106   : > { %v1502_v24 = vpop.eup %1501  ;;  %v659_v16 = vsel %vm2127_vm0, %v658_v9, %v654_v54  ;;  %vm772_vm6 = vweird.f32 %v1498_v7  ;;  %vm891_vm7 = vweird.f32 %v2131_v57  ;;  %v1017_v55 = vand.u32 2147483648, %v2145_v6 }
 0x107   : > { %v1098_v26 = vmul.f32 %v659_v16, %v1989_v47  ;;  %v769_v27 = vmul.f32 %v1498_v7, %v768_v23  ;;  %v887_v28 = vmul.f32 %v1502_v24, %v2131_v57  ;;  %v1015_v30 = vand.u32 2147483647, %v2145_v6  ;;  %vm773_vm10 = vmor %vm771_vm3, %vm772_vm6 }
 0x108   : > { %vm2177_vm8 = vcmp.eq.f32.partialorder %v895_v43, 8.507059e+37  ;;  %v670_v31 = vand.u32 2147483647, %v2149_v10  ;;  %v2182_v32 = vadd.f32 1.0, %v1500_v20  ;;  %1507 = vpow2.f32 %v1306_v4 }
 0x109   : > { %1130 = vst [vmem:[%s2028_s7 + $0x10] sm:$0xff] %v1098_v26  ;;  %v770_v34 = vadd.f32 %v1498_v7, %v769_v27  ;;  %v888_v25 = vsub.f32 1.0, %v887_v28  ;;  %v898_v35 = vor.u32 1.1754944e-38, %v897_v5  ;;  %vm1011_vm9 = vweird.f32 %v2145_v6  ;;  %v404_v27 = vpop.f32.mrf.mxu3  ;;  %v335_v28 = vpop.f32.mrf.mxu0 }
 0x10a   : > { %v1504_v47 = vpop.eup %1503  ;;  %v1018_v37 = vor.u32 1.1754944e-38, %v1017_v55  ;;  %vm666_vm11 = vweird.f32 %v2149_v10  ;;  %1509 = vrcp.f32 %v2182_v32  ;;  %v1314_v38 = vmul.f32 -1.442695, %v2157_v15 }
 0x10b   : > { %v1506_v39 = vpop.eup %1505  ;;  %v774_v40 = vsel %vm773_vm10, %v1498_v7, %v770_v34  ;;  %v889_v41 = vmul.f32 %v1502_v24, %v888_v25  ;;  %vm892_vm12 = vweird.f32 %v1502_v24  ;;  %v1007_v22 = vmul.f32 %v1504_v47, %v2145_v6 }
 0x10c   : > { %vm2193_vm13 = vcmp.eq.f32.partialorder %v1015_v30, 8.507059e+37  ;;  %v779_v36 = vsel %vm2152_vm4, %v778_v52, %v774_v40  ;;  %v662_v29 = vmul.f32 %v1506_v39, %v2149_v10  ;;  %vm2200_vm14 = vcmp.eq.f32.partialorder %v670_v31, 8.507059e+37  ;;  %vm893_vm0 = vmor %vm891_vm7, %vm892_vm12 }
 0x10d   : > { %v672_v46 = vand.u32 2147483648, %v2149_v10  ;;  %v1291_v2 = vmul.f32 -1.442695, %v2166_v17  ;;  %v1106_v58 = vmul.f32 %v779_v36, %v1996_v56  ;;  %v890_v59 = vadd.f32 %v1502_v24, %v889_v41  ;;  %v359_v41 = vpop.f32.mrf.mxu1 }
 0x10e   : > { %v1008_v60 = vsub.f32 1.0, %v1007_v22  ;;  %vm1012_vm15 = vweird.f32 %v1504_v47  ;;  %v1508_v3 = vpop.eup %1507  ;;  %v663_v61 = vsub.f32 1.0, %v662_v29  ;;  %vm667_vm1 = vweird.f32 %v1506_v39 }
 0x10f   : > { %1511 = vpow2.f32 %v1314_v38  ;;  %v432_v62 = vmul.f32 %v1917_v48, %v356_v44  ;;  %1138 = vst [vmem:[%s2028_s7 + $0x50] sm:$0xff] %v1106_v58  ;;  %v894_v63 = vsel %vm893_vm0, %v1502_v24, %v890_v59  ;;  %v2212_v50 = vadd.f32 1.0, %v1508_v3  ;;  %vm1013_vm2 = vmor %vm1011_vm9, %vm1012_vm15  ;;  %v383_v3 = vpop.f32.mrf.mxu2 }
 0x110   : > { %v1009_v51 = vmul.f32 %v1504_v47, %v1008_v60  ;;  %v440_v56 = vmul.f32 %v1917_v48, %v380_v53  ;;  %v1510_v1 = vpop.eup %1509  ;;  %v899_v7 = vsel %vm2177_vm8, %v898_v35, %v894_v63  ;;  %v664_v8 = vmul.f32 %v1506_v39, %v663_v61  ;;  %vm668_vm4 = vmor %vm666_vm11, %vm667_vm1 }
 0x111   : > { %1513 = vpow2.f32 %v1291_v2  ;;  %v2218_v57 = vadd.f32 %v1922_v49, %v432_v62  ;;  %v1114_v9 = vmul.f32 %v899_v7, %v2086_v14  ;;  %v673_v13 = vor.u32 1.1754944e-38, %v672_v46 }
 0x112   : > { %v1010_v11 = vadd.f32 %v1504_v47, %v1009_v51  ;;  %v782_v12 = vmul.f32 %v1510_v1, %v2182_v32  ;;  %v665_v52 = vadd.f32 %v1506_v39, %v664_v8  ;;  %vm786_vm3 = vweird.f32 %v2182_v32  ;;  %v338_v8 = vpop.f32.mrf.mxu0 }
 0x113   : > { %v790_v43 = vand.u32 2147483647, %v2182_v32  ;;  %1515 = vrcp.f32 %v2212_v50  ;;  %1146 = vst [vmem:[%s2028_s7 + $0x90] sm:$0xff] %v1114_v9  ;;  %v792_v20 = vand.u32 2147483648, %v2182_v32  ;;  %v1299_v54 = vmul.f32 -1.442695, %v2218_v57 }
 0x114   : > { %v1014_v4 = vsel %vm1013_vm2, %v1504_v47, %v1010_v11  ;;  %v783_v14 = vsub.f32 1.0, %v782_v12  ;;  %v669_v5 = vsel %vm668_vm4, %v1506_v39, %v665_v52  ;;  %vm787_vm5 = vweird.f32 %v1510_v1 }
 0x115   : > { %v1512_v6 = vpop.eup %1511  ;;  %v1019_v23 = vsel %vm2193_vm13, %v1018_v37, %v1014_v4  ;;  %v2237_v24 = vadd.f32 %v1922_v49, %v440_v56  ;;  %v674_v10 = vsel %vm2200_vm14, %v673_v13, %v669_v5  ;;  %v910_v26 = vand.u32 2147483647, %v2212_v50  ;;  %vm788_vm6 = vmor %vm786_vm3, %vm787_vm5 }
 0x116   : > { %v1122_v16 = vmul.f32 %v1019_v23, %v2094_v18  ;;  %v784_v55 = vmul.f32 %v1510_v1, %v783_v14  ;;  %v1099_v21 = vmul.f32 %v674_v10, %v2097_v19  ;;  %v912_v31 = vand.u32 2147483648, %v2212_v50 }
 0x117   : > { %v1514_v30 = vpop.eup %1513  ;;  %v2245_v34 = vadd.f32 1.0, %v1512_v6  ;;  %1517 = vpow2.f32 %v1299_v54  ;;  %v793_v18 = vor.u32 1.1754944e-38, %v792_v20  ;;  %v1307_v19 = vmul.f32 -1.442695, %v2237_v24 }
 0x118   : > { %1154 = vst [vmem:[%s2028_s7 + $0xd0] sm:$0xff] %v1122_v16  ;;  %v785_v25 = vadd.f32 %v1510_v1, %v784_v55  ;;  %v2248_v35 = vadd.f32 1.0, %v1514_v30  ;;  %v448_v37 = vmul.f32 %v1917_v48, %v404_v27  ;;  %v425_v38 = vmul.f32 %v1917_v48, %v335_v28  ;;  %v407_v16 = vpop.f32.mrf.mxu3 }
 0x119   : > { %v1516_v47 = vpop.eup %1515  ;;  %1131 = vst [vmem:[%s2028_s7 + $0x18] sm:$0xff] %v1099_v21  ;;  %1519 = vrcp.f32 %v2245_v34  ;;  %vm791_vm7 = vcmp.eq.f32.partialorder %v790_v43, 8.507059e+37  ;;  %vm906_vm8 = vweird.f32 %v2212_v50  ;;  %vm2261_vm9 = vcmp.eq.f32.partialorder %v910_v26, 8.507059e+37 }
 0x11a   : > { %v789_v39 = vsel %vm788_vm6, %v1510_v1, %v785_v25  ;;  %v902_v40 = vmul.f32 %v1516_v47, %v2212_v50  ;;  %1521 = vrcp.f32 %v2248_v35  ;;  %v913_v42 = vor.u32 1.1754944e-38, %v912_v31 }
 0x11b   : > { %v794_v22 = vsel %vm791_vm7, %v793_v18, %v789_v39  ;;  %v1030_v29 = vand.u32 2147483647, %v2245_v34  ;;  %v1032_v45 = vand.u32 2147483648, %v2245_v34  ;;  %1523 = vpow2.f32 %v1307_v19 }
 0x11c   : > { %v1107_v44 = vmul.f32 %v794_v22, %v2110_v33  ;;  %v903_v36 = vsub.f32 1.0, %v902_v40  ;;  %v2269_v2 = vadd.f32 %v1922_v49, %v448_v37  ;;  %v2272_v53 = vadd.f32 %v1922_v49, %v425_v38 }
 0x11d   : > { %v1518_v46 = vpop.eup %1517  ;;  %v433_v58 = vmul.f32 %v1917_v48, %v359_v41  ;;  %vm907_vm10 = vweird.f32 %v1516_v47  ;;  %v685_v33 = vand.u32 2147483647, %v2248_v35  ;;  %vm1026_vm11 = vweird.f32 %v2245_v34 }
 0x11e   : > { %1139 = vst [vmem:[%s2028_s7 + $0x58] sm:$0xff] %v1107_v44  ;;  %v904_v59 = vmul.f32 %v1516_v47, %v903_v36  ;;  %v2277_v60 = vadd.f32 1.0, %v1518_v46  ;;  %v687_v62 = vand.u32 2147483648, %v2248_v35  ;;  %v1315_v63 = vmul.f32 -1.442695, %v2269_v2  ;;  %vm908_vm13 = vmor %vm906_vm8, %vm907_vm10 }
 0x11f   : > { %v1520_v61 = vpop.eup %1519  ;;  %v1292_v51 = vmul.f32 -1.442695, %v2272_v53  ;;  %vm2284_vm12 = vcmp.eq.f32.partialorder %v1030_v29, 8.507059e+37  ;;  %v1033_v9 = vor.u32 1.1754944e-38, %v1032_v45  ;;  %vm681_vm14 = vweird.f32 %v2248_v35 }
 0x120   : > { %v1522_v56 = vpop.eup %1521  ;;  %v905_v1 = vadd.f32 %v1516_v47, %v904_v59  ;;  %v1022_v7 = vmul.f32 %v1520_v61, %v2245_v34  ;;  %1525 = vrcp.f32 %v2277_v60  ;;  %v2295_v13 = vadd.f32 %v1922_v49, %v433_v58 }
 0x121   : > { %v677_v11 = vmul.f32 %v1522_v56, %v2248_v35  ;;  %v441_v12 = vmul.f32 %v1917_v48, %v383_v3  ;;  %vm2298_vm15 = vcmp.eq.f32.partialorder %v685_v33, 8.507059e+37  ;;  %1527 = vpow2.f32 %v1315_v63  ;;  %v1524_v14 = vpop.eup %1523 }
 0x122   : > { %v909_v52 = vsel %vm908_vm13, %v1516_v47, %v905_v1  ;;  %v1023_v43 = vsub.f32 1.0, %v1022_v7  ;;  %v688_v54 = vor.u32 1.1754944e-38, %v687_v62  ;;  %1529 = vpow2.f32 %v1292_v51 }
 0x123   : > { %v914_v50 = vsel %vm2261_vm9, %v913_v42, %v909_v52  ;;  %v678_v20 = vsub.f32 1.0, %v677_v11  ;;  %vm1027_vm0 = vweird.f32 %v1520_v61  ;;  %v2305_v5 = vadd.f32 1.0, %v1524_v14 }
 0x124   : > { %v1115_v6 = vmul.f32 %v914_v50, %v2140_v0  ;;  %v1024_v23 = vmul.f32 %v1520_v61, %v1023_v43  ;;  %vm682_vm1 = vweird.f32 %v1522_v56  ;;  %v1300_v55 = vmul.f32 -1.442695, %v2295_v13  ;;  %vm1028_vm3 = vmor %vm1026_vm11, %vm1027_vm0 }
 0x125   : > { %v679_v10 = vmul.f32 %v1522_v56, %v678_v20  ;;  %v2309_v26 = vadd.f32 %v1922_v49, %v441_v12  ;;  %vm801_vm2 = vweird.f32 %v2277_v60  ;;  %v805_v30 = vand.u32 2147483647, %v2277_v60  ;;  %vm683_vm4 = vmor %vm681_vm14, %vm682_vm1 }
 0x126   : > { %v1526_v27 = vpop.eup %1525  ;;  %1147 = vst [vmem:[%s2028_s7 + $0x98] sm:$0xff] %v1115_v6  ;;  %v1025_v28 = vadd.f32 %v1520_v61, %v1024_v23  ;;  %1531 = vrcp.f32 %v2305_v5  ;;  %v807_v31 = vand.u32 2147483648, %v2277_v60  ;;  %v449_v25 = vmul.f32 %v1917_v48, %v407_v16 }
 0x127   : > { %v680_v0 = vadd.f32 %v1522_v56, %v679_v10  ;;  %v797_v21 = vmul.f32 %v1526_v27, %v2277_v60  ;;  %v1528_v18 = vpop.eup %1527  ;;  %v925_v19 = vand.u32 2147483647, %v2305_v5  ;;  %1533 = vpow2.f32 %v1300_v55  ;;  %v362_v55 = vpop.f32.mrf.mxu1 }
 0x128   : > { %v1029_v47 = vsel %vm1028_vm3, %v1520_v61, %v1025_v28  ;;  %v1308_v34 = vmul.f32 -1.442695, %v2309_v26  ;;  %v1530_v37 = vpop.eup %1529  ;;  %v927_v41 = vand.u32 2147483648, %v2305_v5  ;;  %v2331_v32 = vadd.f32 1.0, %v1528_v18 }
 0x129   : > { %v1034_v38 = vsel %vm2284_vm12, %v1033_v9, %v1029_v47  ;;  %v684_v39 = vsel %vm683_vm4, %v1522_v56, %v680_v0  ;;  %v798_v40 = vsub.f32 1.0, %v797_v21  ;;  %v2333_v42 = vadd.f32 1.0, %v1530_v37  ;;  %v2402_v47 = vld [vmem:[%s2616_s2] ss:$0 sm:$0xff] }
 0x12a   : > { %v1123_v22 = vmul.f32 %v1034_v38, %v2157_v15  ;;  %v689_v35 = vsel %vm2298_vm15, %v688_v54, %v684_v39  ;;  %vm802_vm5 = vweird.f32 %v1526_v27  ;;  %1535 = vpow2.f32 %v1308_v34  ;;  %v386_v34 = vpop.f32.mrf.mxu2  ;;  %v410_v39 = vpop.f32.mrf.mxu3 }
 0x12b   : > { %v1100_v44 = vmul.f32 %v689_v35, %v2166_v17  ;;  %v799_v36 = vmul.f32 %v1526_v27, %v798_v40  ;;  %vm2337_vm6 = vcmp.eq.f32.partialorder %v805_v30, 8.507059e+37  ;;  %1537 = vrcp.f32 %v2331_v32  ;;  %vm803_vm7 = vmor %vm801_vm2, %vm802_vm5 }
 0x12c   : > { %v1532_v29 = vpop.eup %1531  ;;  %1155 = vst [vmem:[%s2028_s7 + $0xd8] sm:$0xff] %v1123_v22  ;;  %v2343_v15 = vadd.f32 %v1922_v49, %v449_v25  ;;  %v808_v58 = vor.u32 1.1754944e-38, %v807_v31  ;;  %1539 = vrcp.f32 %v2333_v42  ;;  %vm921_vm8 = vweird.f32 %v2305_v5  ;;  %v2394_v25 = vld [vmem:[%s2617_s3] ss:$0 sm:$0xff] }
 0x12d   : > { %1132 = vst [vmem:[%s2028_s7 + $0x20] sm:$0xff] %v1100_v44  ;;  %v800_v46 = vadd.f32 %v1526_v27, %v799_v36  ;;  %v917_v59 = vmul.f32 %v1532_v29, %v2305_v5  ;;  %v1534_v17 = vpop.eup %1533  ;;  %vm2351_vm9 = vcmp.eq.f32.partialorder %v925_v19, 8.507059e+37  ;;  %v928_v3 = vor.u32 1.1754944e-38, %v927_v41 }
 0x12e   : > { %v1047_v49 = vand.u32 2147483648, %v2331_v32  ;;  %v1045_v63 = vand.u32 2147483647, %v2331_v32  ;;  %v2357_v51 = vadd.f32 1.0, %v1534_v17  ;;  %v700_v60 = vand.u32 2147483647, %v2333_v42 }
 0x12f   : > { %v804_v61 = vsel %vm803_vm7, %v1526_v27, %v800_v46  ;;  %v918_v62 = vsub.f32 1.0, %v917_v59  ;;  %v702_v1 = vand.u32 2147483648, %v2333_v42  ;;  %v1316_v7 = vmul.f32 -1.442695, %v2343_v15 }
 0x130   : > { %v809_v56 = vsel %vm2337_vm6, %v808_v58, %v804_v61  ;;  %v1536_v9 = vpop.eup %1535  ;;  %vm922_vm10 = vweird.f32 %v1532_v29  ;;  %1541 = vrcp.f32 %v2357_v51  ;;  %vm1041_vm11 = vweird.f32 %v2331_v32 }
 0x131   : > { %v1108_v11 = vmul.f32 %v809_v56, %v2218_v57  ;;  %v919_v12 = vmul.f32 %v1532_v29, %v918_v62  ;;  %v1538_v52 = vpop.eup %1537  ;;  %v1048_v43 = vor.u32 1.1754944e-38, %v1047_v49  ;;  %vm696_vm12 = vweird.f32 %v2333_v42  ;;  %vm923_vm14 = vmor %vm921_vm8, %vm922_vm10 }
 0x132   : > { %v2368_v4 = vadd.f32 1.0, %v1536_v9  ;;  %v1540_v14 = vpop.eup %1539  ;;  %v1037_v20 = vmul.f32 %v1538_v52, %v2331_v32  ;;  %vm2372_vm13 = vcmp.eq.f32.partialorder %v1045_v63, 8.507059e+37  ;;  %1543 = vpow2.f32 %v1316_v7  ;;  %v341_v63 = vpop.f32.mrf.mxu0 }
 0x133   : > { %1140 = vst [vmem:[%s2028_s7 + $0x60] sm:$0xff] %v1108_v11  ;;  %v920_v50 = vadd.f32 %v1532_v29, %v919_v12  ;;  %v426_v57 = vmul.f32 %v1917_v48, %v338_v8  ;;  %v692_v6 = vmul.f32 %v1540_v14, %v2333_v42  ;;  %vm2380_vm15 = vcmp.eq.f32.partialorder %v700_v60, 8.507059e+37 }
 0x134   : > { %v703_v16 = vor.u32 1.1754944e-38, %v702_v1  ;;  %v820_v10 = vand.u32 2147483647, %v2357_v51  ;;  %v1038_v28 = vsub.f32 1.0, %v1037_v20  ;;  %vm816_vm0 = vweird.f32 %v2357_v51 }
 0x135   : > { %v924_v27 = vsel %vm923_vm14, %v1532_v29, %v920_v50  ;;  %1545 = vrcp.f32 %v2368_v4  ;;  %vm1042_vm1 = vweird.f32 %v1538_v52  ;;  %v693_v5 = vsub.f32 1.0, %v692_v6  ;;  %v389_v6 = vpop.f32.mrf.mxu2 }
 0x136   : > { %v929_v48 = vsel %vm2351_vm9, %v928_v3, %v924_v27  ;;  %v822_v30 = vand.u32 2147483648, %v2357_v51  ;;  %v1542_v0 = vpop.eup %1541  ;;  %v1039_v31 = vmul.f32 %v1538_v52, %v1038_v28  ;;  %v2397_v18 = vadd.f32 %v2394_v25, %v426_v57  ;;  %vm1043_vm5 = vmor %vm1041_vm11, %vm1042_vm1 }
 0x137   : > { %v1116_v21 = vmul.f32 %v929_v48, %v2237_v24  ;;  %v434_v19 = vmul.f32 %v2402_v47, %v362_v55  ;;  %v694_v37 = vmul.f32 %v1540_v14, %v693_v5  ;;  %vm697_vm2 = vweird.f32 %v1540_v14 }
 0x138   : > { %v812_v24 = vmul.f32 %v1542_v0, %v2357_v51  ;;  %vm2406_vm3 = vcmp.eq.f32.partialorder %v820_v10, 8.507059e+37  ;;  %v1544_v40 = vpop.eup %1543  ;;  %v1040_v41 = vadd.f32 %v1538_v52, %v1039_v31  ;;  %vm817_vm4 = vweird.f32 %v1542_v0  ;;  %vm698_vm6 = vmor %vm696_vm12, %vm697_vm2 }
 0x139   : > { %1148 = vst [vmem:[%s2028_s7 + $0xa0] sm:$0xff] %v1116_v21  ;;  %v1293_v22 = vmul.f32 -1.442695, %v2397_v18  ;;  %v2413_v35 = vadd.f32 %v2394_v25, %v434_v19  ;;  %v695_v44 = vadd.f32 %v1540_v14, %v694_v37  ;;  %v2418_v29 = vadd.f32 1.0, %v1544_v40  ;;  %vm818_vm7 = vmor %vm816_vm0, %vm817_vm4 }
 0x13a   : > { %v813_v36 = vsub.f32 1.0, %v812_v24  ;;  %v442_v45 = vmul.f32 %v2402_v47, %v386_v34  ;;  %v1044_v58 = vsel %vm1043_vm5, %v1538_v52, %v1040_v41  ;;  %v450_v17 = vmul.f32 %v2402_v47, %v410_v39  ;;  %v365_v52 = vpop.f32.mrf.mxu1 }
 0x13b   : > { %v1546_v46 = vpop.eup %1545  ;;  %1547 = vpow2.f32 %v1293_v22  ;;  %v1301_v59 = vmul.f32 -1.442695, %v2413_v35  ;;  %v1049_v32 = vsel %vm2372_vm13, %v1048_v43, %v1044_v58  ;;  %v699_v33 = vsel %vm698_vm6, %v1540_v14, %v695_v44 }
 0x13c   : > { %v814_v3 = vmul.f32 %v1542_v0, %v813_v36  ;;  %v932_v49 = vmul.f32 %v1546_v46, %v2368_v4  ;;  %v1124_v61 = vmul.f32 %v1049_v32, %v2269_v2  ;;  %v704_v42 = vsel %vm2380_vm15, %v703_v16, %v699_v33  ;;  %v413_v36 = vpop.f32.mrf.mxu3 }
 0x13d   : > { %v823_v62 = vor.u32 1.1754944e-38, %v822_v30  ;;  %1549 = vrcp.f32 %v2418_v29  ;;  %v1101_v56 = vmul.f32 %v704_v42, %v2272_v53  ;;  %v940_v7 = vand.u32 2147483647, %v2368_v4 }
 0x13e   : > { %v815_v60 = vadd.f32 %v1542_v0, %v814_v3  ;;  %v933_v1 = vsub.f32 1.0, %v932_v49  ;;  %1156 = vst [vmem:[%s2028_s7 + $0xe0] sm:$0xff] %v1124_v61  ;;  %vm937_vm8 = vweird.f32 %v1546_v46  ;;  %v942_v2 = vand.u32 2147483648, %v2368_v4 }
 0x13f   : > { %1551 = vpow2.f32 %v1301_v59  ;;  %v2441_v8 = vadd.f32 %v2394_v25, %v442_v45  ;;  %1133 = vst [vmem:[%s2028_s7 + $0x28] sm:$0xff] %v1101_v56  ;;  %v2445_v53 = vadd.f32 %v2394_v25, %v450_v17  ;;  %v427_v12 = vmul.f32 %v2402_v47, %v341_v63 }
 0x140   : > { %v819_v9 = vsel %vm818_vm7, %v1542_v0, %v815_v60  ;;  %v934_v11 = vmul.f32 %v1546_v46, %v933_v1  ;;  %vm936_vm9 = vweird.f32 %v2368_v4  ;;  %v943_v16 = vor.u32 1.1754944e-38, %v942_v2 }
 0x141   : > { %v1548_v43 = vpop.eup %1547  ;;  %v824_v51 = vsel %vm2406_vm3, %v823_v62, %v819_v9  ;;  %v1309_v14 = vmul.f32 -1.442695, %v2441_v8  ;;  %v1317_v57 = vmul.f32 -1.442695, %v2445_v53  ;;  %vm938_vm10 = vmor %vm936_vm9, %vm937_vm8  ;;  %v2458_v10 = vadd.f32 %v2394_v25, %v427_v12 }
 0x142   : > { %v1109_v50 = vmul.f32 %v824_v51, %v2295_v13  ;;  %v935_v20 = vadd.f32 %v1546_v46, %v934_v11  ;;  %v2453_v54 = vadd.f32 1.0, %v1548_v43  ;;  %v435_v4 = vmul.f32 %v2402_v47, %v365_v52 }
 0x143   : > { %v1550_v23 = vpop.eup %1549  ;;  %1553 = vpow2.f32 %v1309_v14  ;;  %vm941_vm11 = vcmp.eq.f32.partialorder %v940_v7, 8.507059e+37  ;;  %v443_v48 = vmul.f32 %v2402_v47, %v389_v6  ;;  %v1062_v21 = vand.u32 2147483648, %v2418_v29 }
 0x144   : > { %1141 = vst [vmem:[%s2028_s7 + $0x68] sm:$0xff] %v1109_v50  ;;  %v939_v55 = vsel %vm938_vm10, %v1546_v46, %v935_v20  ;;  %v1052_v13 = vmul.f32 %v1550_v23, %v2418_v29  ;;  %1555 = vrcp.f32 %v2453_v54  ;;  %v1294_v31 = vmul.f32 -1.442695, %v2458_v10 }
 0x145   : > { %v1552_v27 = vpop.eup %1551  ;;  %v944_v28 = vsel %vm941_vm11, %v943_v16, %v939_v55  ;;  %1557 = vpow2.f32 %v1317_v57  ;;  %v2471_v19 = vadd.f32 %v2394_v25, %v435_v4  ;;  %vm1057_vm12 = vweird.f32 %v1550_v23 }
 0x146   : > { %v1117_v5 = vmul.f32 %v944_v28, %v2309_v26  ;;  %v1053_v30 = vsub.f32 1.0, %v1052_v13  ;;  %v2466_v0 = vadd.f32 1.0, %v1552_v27  ;;  %v1060_v37 = vand.u32 2147483647, %v2418_v29 }
 0x147   : > { %v1302_v26 = vmul.f32 -1.442695, %v2471_v19  ;;  %vm1056_vm13 = vweird.f32 %v2418_v29  ;;  %v2481_v41 = vadd.f32 %v2394_v25, %v443_v48  ;;  %v1063_v22 = vor.u32 1.1754944e-38, %v1062_v21 }
 0x148   : > { %1149 = vst [vmem:[%s2028_s7 + $0xa8] sm:$0xff] %v1117_v5  ;;  %v1054_v34 = vmul.f32 %v1550_v23, %v1053_v30  ;;  %1559 = vrcp.f32 %v2466_v0  ;;  %vm1058_vm14 = vmor %vm1056_vm13, %vm1057_vm12  ;;  %vm1061_vm15 = vcmp.eq.f32.partialorder %v1060_v37, 8.507059e+37  ;;  %v715_v58 = vand.u32 2147483647, %v2453_v54 }
 0x149   : > { %v1554_v24 = vpop.eup %1553  ;;  %1561 = vpow2.f32 %v1294_v31  ;;  %v717_v3 = vand.u32 2147483648, %v2453_v54  ;;  %v1310_v49 = vmul.f32 -1.442695, %v2481_v41  ;;  %v451_v61 = vmul.f32 %v2402_v47, %v413_v36 }
 0x14a   : > { %v1556_v38 = vpop.eup %1555  ;;  %v1055_v39 = vadd.f32 %v1550_v23, %v1054_v34  ;;  %v2478_v40 = vadd.f32 1.0, %v1554_v24  ;;  %1563 = vpow2.f32 %v1302_v26  ;;  %vm711_vm0 = vweird.f32 %v2453_v54 }
 0x14b   : > { %v707_v44 = vmul.f32 %v1556_v38, %v2453_v54  ;;  %v1558_v45 = vpop.eup %1557  ;;  %vm712_vm1 = vweird.f32 %v1556_v38  ;;  %vm2495_vm2 = vcmp.eq.f32.partialorder %v715_v58, 8.507059e+37  ;;  %v837_v60 = vand.u32 2147483648, %v2466_v0 }
 0x14c   : > { %v1059_v46 = vsel %vm1058_vm14, %v1550_v23, %v1055_v39  ;;  %1565 = vrcp.f32 %v2478_v40  ;;  %v2486_v17 = vadd.f32 1.0, %v1558_v45  ;;  %vm713_vm3 = vmor %vm711_vm0, %vm712_vm1  ;;  %v718_v11 = vor.u32 1.1754944e-38, %v717_v3 }
 0x14d   : > { %v1064_v29 = vsel %vm1061_vm15, %v1063_v22, %v1059_v46  ;;  %v708_v59 = vsub.f32 1.0, %v707_v44  ;;  %vm831_vm4 = vweird.f32 %v2466_v0  ;;  %v2508_v52 = vadd.f32 %v2394_v25, %v451_v61 }
 0x14e   : > { %v1560_v32 = vpop.eup %1559  ;;  %v1125_v33 = vmul.f32 %v1064_v29, %v2343_v15  ;;  %v835_v15 = vand.u32 2147483647, %v2466_v0  ;;  %1567 = vrcp.f32 %v2486_v17  ;;  %v838_v25 = vor.u32 1.1754944e-38, %v837_v60 }
 0x14f   : > { %v1562_v42 = vpop.eup %1561  ;;  %v709_v62 = vmul.f32 %v1556_v38, %v708_v59  ;;  %v827_v63 = vmul.f32 %v1560_v32, %v2466_v0  ;;  %1569 = vpow2.f32 %v1310_v49  ;;  %vm832_vm5 = vweird.f32 %v1560_v32 }
 0x150   : > { %1157 = vst [vmem:[%s2028_s7 + $0xe8] sm:$0xff] %v1125_v33  ;;  %v1564_v1 = vpop.eup %1563  ;;  %v2502_v2 = vadd.f32 1.0, %v1562_v42  ;;  %vm2513_vm6 = vcmp.eq.f32.partialorder %v835_v15, 8.507059e+37  ;;  %vm833_vm7 = vmor %vm831_vm4, %vm832_vm5  ;;  %v955_v16 = vand.u32 2147483647, %v2478_v40  ;;  %v957_v4 = vand.u32 2147483648, %v2478_v40 }
 0x151   : > { %v710_v47 = vadd.f32 %v1556_v38, %v709_v62  ;;  %v828_v7 = vsub.f32 1.0, %v827_v63  ;;  %v2505_v12 = vadd.f32 1.0, %v1564_v1  ;;  %v1318_v55 = vmul.f32 -1.442695, %v2508_v52 }
 0x152   : > { %v1566_v9 = vpop.eup %1565  ;;  %1571 = vrcp.f32 %v2502_v2  ;;  %vm951_vm9 = vweird.f32 %v2478_v40  ;;  %v1075_v5 = vand.u32 2147483647, %v2486_v17  ;;  %v1077_v30 = vand.u32 2147483648, %v2486_v17 }
 0x153   : > { %v714_v43 = vsel %vm713_vm3, %v1556_v38, %v710_v47  ;;  %v829_v51 = vmul.f32 %v1560_v32, %v828_v7  ;;  %v947_v14 = vmul.f32 %v1566_v9, %v2478_v40  ;;  %1573 = vrcp.f32 %v2505_v12 }
 0x154   : > { %v719_v50 = vsel %vm2495_vm2, %v718_v11, %v714_v43  ;;  %v1568_v23 = vpop.eup %1567  ;;  %vm952_vm8 = vweird.f32 %v1566_v9  ;;  %vm956_vm11 = vcmp.eq.f32.partialorder %v955_v16, 8.507059e+37  ;;  %v958_v24 = vor.u32 1.1754944e-38, %v957_v4 }
 0x155   : > { %v1102_v54 = vmul.f32 %v719_v50, %v2397_v18  ;;  %v830_v57 = vadd.f32 %v1560_v32, %v829_v51  ;;  %v948_v6 = vsub.f32 1.0, %v947_v14  ;;  %v1570_v13 = vpop.eup %1569  ;;  %v1067_v18 = vmul.f32 %v1568_v23, %v2486_v17  ;;  %vm953_vm10 = vmor %vm951_vm9, %vm952_vm8 }
 0x156   : > { %v2533_v34 = vadd.f32 1.0, %v1570_v13  ;;  %vm1071_vm12 = vweird.f32 %v2486_v17  ;;  %1575 = vpow2.f32 %v1318_v55  ;;  %vm1072_vm13 = vweird.f32 %v1568_v23 }
 0x157   : > { %1134 = vst [vmem:[%s2028_s7 + $0x30] sm:$0xff] %v1102_v54  ;;  %v834_v27 = vsel %vm833_vm7, %v1560_v32, %v830_v57  ;;  %v949_v28 = vmul.f32 %v1566_v9, %v948_v6  ;;  %v1068_v31 = vsub.f32 1.0, %v1067_v18  ;;  %vm2538_vm14 = vcmp.eq.f32.partialorder %v1075_v5, 8.507059e+37  ;;  %vm1073_vm15 = vmor %vm1071_vm12, %vm1072_vm13 }
 0x158   : > { %v839_v48 = vsel %vm2513_vm6, %v838_v25, %v834_v27  ;;  %v1572_v37 = vpop.eup %1571  ;;  %v1078_v44 = vor.u32 1.1754944e-38, %v1077_v30  ;;  %1577 = vrcp.f32 %v2533_v34  ;;  %vm726_vm0 = vweird.f32 %v2502_v2 }
 0x159   : > { %v1110_v0 = vmul.f32 %v839_v48, %v2413_v35  ;;  %v950_v21 = vadd.f32 %v1566_v9, %v949_v28  ;;  %v1069_v38 = vmul.f32 %v1568_v23, %v1068_v31  ;;  %v722_v39 = vmul.f32 %v1572_v37, %v2502_v2  ;;  %v1574_v40 = vpop.eup %1573 }
 0x15a   : > { %v842_v58 = vmul.f32 %v1574_v40, %v2505_v12  ;;  %v730_v29 = vand.u32 2147483647, %v2502_v2  ;;  %v732_v59 = vand.u32 2147483648, %v2502_v2  ;;  %vm846_vm1 = vweird.f32 %v2505_v12 }
 0x15b   : > { %1142 = vst [vmem:[%s2028_s7 + $0x70] sm:$0xff] %v1110_v0  ;;  %v954_v26 = vsel %vm953_vm10, %v1566_v9, %v950_v21  ;;  %v1070_v45 = vadd.f32 %v1568_v23, %v1069_v38  ;;  %v723_v46 = vsub.f32 1.0, %v722_v39  ;;  %vm727_vm2 = vweird.f32 %v1572_v37 }
 0x15c   : > { %v959_v35 = vsel %vm956_vm11, %v958_v24, %v954_v26  ;;  %v1576_v3 = vpop.eup %1575  ;;  %vm847_vm3 = vweird.f32 %v1574_v40  ;;  %v850_v17 = vand.u32 2147483647, %v2505_v12  ;;  %v852_v61 = vand.u32 2147483648, %v2505_v12  ;;  %vm728_vm4 = vmor %vm726_vm0, %vm727_vm2 }
 0x15d   : > { %v1118_v36 = vmul.f32 %v959_v35, %v2441_v8  ;;  %v1074_v32 = vsel %vm1073_vm15, %v1568_v23, %v1070_v45  ;;  %v724_v33 = vmul.f32 %v1572_v37, %v723_v46  ;;  %v843_v8 = vsub.f32 1.0, %v842_v58  ;;  %vm848_vm6 = vmor %vm846_vm1, %vm847_vm3 }
 0x15e   : > { %v1079_v49 = vsel %vm2538_vm14, %v1078_v44, %v1074_v32  ;;  %v615_v56 = vadd.f32 1.0, %v1576_v3  ;;  %v1578_v15 = vpop.eup %1577  ;;  %v733_v60 = vor.u32 1.1754944e-38, %v732_v59  ;;  %vm731_vm5 = vcmp.eq.f32.partialorder %v730_v29, 8.507059e+37 }
 0x15f   : > { %1150 = vst [vmem:[%s2028_s7 + $0xb0] sm:$0xff] %v1118_v36  ;;  %v1126_v42 = vmul.f32 %v1079_v49, %v2445_v53  ;;  %v725_v62 = vadd.f32 %v1572_v37, %v724_v33  ;;  %v844_v63 = vmul.f32 %v1574_v40, %v843_v8  ;;  %v962_v7 = vmul.f32 %v1578_v15, %v2533_v34 }
 0x160   : > { %v853_v53 = vor.u32 1.1754944e-38, %v852_v61  ;;  %1579 = vrcp.f32 %v615_v56  ;;  %vm851_vm7 = vcmp.eq.f32.partialorder %v850_v17, 8.507059e+37  ;;  %v972_v14 = vand.u32 2147483648, %v2533_v34 }
 0x161   : > { %1158 = vst [vmem:[%s2028_s7 + $0xf0] sm:$0xff] %v1126_v42  ;;  %v729_v1 = vsel %vm728_vm4, %v1572_v37, %v725_v62  ;;  %v845_v47 = vadd.f32 %v1574_v40, %v844_v63  ;;  %v963_v43 = vsub.f32 1.0, %v962_v7  ;;  %vm967_vm8 = vweird.f32 %v1578_v15 }
 0x162   : > { %v734_v9 = vsel %vm731_vm5, %v733_v60, %v729_v1  ;;  %v970_v54 = vand.u32 2147483647, %v2533_v34  ;;  %vm966_vm9 = vweird.f32 %v2533_v34  ;;  %v973_v57 = vor.u32 1.1754944e-38, %v972_v14 }
 0x163   : > { %v1103_v11 = vmul.f32 %v734_v9, %v2458_v10  ;;  %v849_v2 = vsel %vm848_vm6, %v1574_v40, %v845_v47  ;;  %v964_v20 = vmul.f32 %v1578_v15, %v963_v43  ;;  %vm968_vm10 = vmor %vm966_vm9, %vm967_vm8  ;;  %v1092_v4 = vand.u32 2147483648, %v615_v56 }
 0x164   : > { %v854_v51 = vsel %vm851_vm7, %v853_v53, %v849_v2  ;;  %vm971_vm11 = vcmp.eq.f32.partialorder %v970_v54, 8.507059e+37  ;;  %v1090_v13 = vand.u32 2147483647, %v615_v56  ;;  %vm1086_vm13 = vweird.f32 %v615_v56 }
 0x165   : > { %1135 = vst [vmem:[%s2028_s7 + $0x38] sm:$0xff] %v1103_v11  ;;  %v1111_v50 = vmul.f32 %v854_v51, %v2471_v19  ;;  %v965_v12 = vadd.f32 %v1578_v15, %v964_v20  ;;  %v1093_v28 = vor.u32 1.1754944e-38, %v1092_v4 }
 0x166   : > { %v1580_v10 = vpop.eup %1579  ;;  %vm1091_vm15 = vcmp.eq.f32.partialorder %v1090_v13, 8.507059e+37 }
 0x167   : > { %1143 = vst [vmem:[%s2028_s7 + $0x78] sm:$0xff] %v1111_v50  ;;  %v969_v25 = vsel %vm968_vm10, %v1578_v15, %v965_v12  ;;  %v1082_v6 = vmul.f32 %v1580_v10, %v615_v56  ;;  %vm1087_vm12 = vweird.f32 %v1580_v10 }
 0x168   : > { %v974_v23 = vsel %vm971_vm11, %v973_v57, %v969_v25  ;;  %vm1088_vm14 = vmor %vm1086_vm13, %vm1087_vm12 }
 0x169   : > { %v1119_v19 = vmul.f32 %v974_v23, %v2481_v41  ;;  %v1083_v16 = vsub.f32 1.0, %v1082_v6 }
 0x16b   : > { %1151 = vst [vmem:[%s2028_s7 + $0xb8] sm:$0xff] %v1119_v19  ;;  %v1084_v55 = vmul.f32 %v1580_v10, %v1083_v16 }
 0x16d   : > { %v1085_v27 = vadd.f32 %v1580_v10, %v1084_v55 }
 0x16f   : > { %v1089_v41 = vsel %vm1088_vm14, %v1580_v10, %v1085_v27 }
 0x170   : > { %v1094_v18 = vsel %vm1091_vm15, %v1093_v28, %v1089_v41 }
 0x171   : > { %v1127_v48 = vmul.f32 %v1094_v18, %v2508_v52 }
 0x173   : > { %1159 = vst [vmem:[%s2028_s7 + $0xf8] sm:$0xff] %v1127_v48 }
 0x174   : > { %1670 = shalt.err (!%p1667_p0)
}
 0x175   : > { %s1734_s10 = smov 128   ;;  %s1735_s7 = smov 8  }
 0x176   : > { %1380 = dma.vmem_to_hbm [thread:$0]  (%p1843_p5), %s1176_s24, 4096, %s1178_s18, %s1161_s13, %s1734_s10, %s1734_s10, %s1735_s7  }
 0x177 PF: > { %s1192_s9 = sand.u32 1, %s1709_s15   ;;  %p1391_p3 = pnand %p1279_p11, %p1810_p6 }
 0x178   : > { %s1193_s14 = scalar_lea.sflag [#allocation4], %s1192_s9 }
 0x179   : > { %p1392_p7 = pneg %p1391_p3 }
 0x17b   : > { %1704 = dma.done.wait (%p1392_p7), %s1193_s14, 4096  }
 0x17c   : > { %1706 = vsyncadd (%p1392_p7), %s1193_s14, 4294963200  ;;  %s21_s20 = sadd.s32 1, %s1729_s20   ;;  %s2680_s12 = sld [smem:[#allocation11_spill]] }
 0x17d   : > { %p18_p9 = scmp.ge.s32.totalorder %s21_s20, 4   ;;  %s2681_s15 = smov %s1713_s16 }
 0x17e   : > { %s2682_s16 = smov %s1717_s17  ;;  %s2683_s17 = smov %s1852_s22 }
 0x17f   : > { %s2684_s18 = smov %s1725_s19  ;;  %20 = sbr.rel (!%p18_p9) target bundleno = 9 (0x9), region = 85 }
 0x182   : > { %s2685_s19 = smov %s2680_s12 }
 0x184   :  { %1199 = vsyncpa [#allocation3], 1 }
 0x185   :  { %1201 = vsyncpa [#allocation3 + $0x1], 1 }
 0x186   :  { %1202 = vsyncpa [#allocation6], 1 }
 0x187   :  { %1203 = vsyncpa [#allocation4], 1 }
 0x188   :  { %1205 = vsyncpa [#allocation4 + $0x1], 1 }

</bundles_post_ra>
